<compile_context>
chip_gen: v7x
topology: tpu7x:2x2x1
jax: 0.10.0
libtpu: 0.0.40
codegen_flags: <defaults>
</compile_context>

<pallas_src>
import jax
import jax.numpy as jnp
from jax import lax
from jax.experimental import pallas as pl
from jax.experimental.pallas import tpu as pltpu


# ----------------------------- kernel -------------------------------------- #

def _layernorm(x, gamma, beta, eps=1e-5):
    mean = jnp.mean(x, axis=-1, keepdims=True)
    var = jnp.mean((x - mean) ** 2, axis=-1, keepdims=True)
    return (x - mean) * lax.rsqrt(var + eps) * gamma + beta


def _processor_kernel(src_ref, dst_ref, dstT_ref, hn_ref, he_ref,
                      ew1s_ref, ew1d_ref, ew1e_ref, eb1_ref,
                      ew2_ref, eb2_ref, eg_ref, ebt_ref,
                      nw1x_ref, nw1a_ref, nb1_ref,
                      nw2_ref, nb2_ref, ng_ref, nbt_ref,
                      out_node_ref, out_edge_ref,
                      g_sc, gdT_sc):
    l = pl.program_id(0)
    E, N2 = g_sc.shape
    N = N2 // 2
    bf16 = jnp.bfloat16
    f32 = jnp.float32

    @pl.when(l == 0)
    def _init():
        # Node/edge state lives in the VMEM-resident output blocks.
        out_node_ref[...] = hn_ref[...]
        out_edge_ref[...] = he_ref[...]
        # Stacked gather one-hot  G = [g_src | g_dst] : [E, 2N]  (exact in bf16).
        ids2 = lax.broadcasted_iota(jnp.int32, (E, 2 * N), 1)
        g = jnp.where(ids2 < N,
                      (src_ref[...] == ids2).astype(f32),
                      (dst_ref[...] == (ids2 - N)).astype(f32))
        g_sc[...] = g.astype(bf16)
        # Pre-transposed scatter one-hot  g_dst^T : [N, E]  (no in-kernel transpose).
        idn = lax.broadcasted_iota(jnp.int32, (N, E), 0)
        gdT_sc[...] = (dstT_ref[...] == idn).astype(f32).astype(bf16)

    x = out_node_ref[...]                                  # [N, Dn] f32 carry
    e = out_edge_ref[...]                                  # [E, De] f32 carry
    xb = x.astype(bf16)

    # ---- edge update: e' = e + LN(W2 relu(W1 [x_src, x_dst, e] + b1) + b2) ----
    # W1 split into row blocks -> no [E, 2Dn+De] concat; gather fused into one
    # deeper-K matmul on the (already projected) node features.
    xs = jnp.dot(xb, ew1s_ref[...], preferred_element_type=f32)    # [N, De]
    xd = jnp.dot(xb, ew1d_ref[...], preferred_element_type=f32)    # [N, De]
    proj = jnp.concatenate([xs, xd], axis=0).astype(bf16)          # [2N, De]
    h = jnp.dot(g_sc[...], proj, preferred_element_type=f32)       # fused gather
    h = h + jnp.dot(e.astype(bf16), ew1e_ref[...], preferred_element_type=f32)
    h = h + eb1_ref[...]
    h = jnp.maximum(h, 0.0)
    h = jnp.dot(h.astype(bf16), ew2_ref[...], preferred_element_type=f32)
    h = h + eb2_ref[...]
    h = _layernorm(h, eg_ref[...], ebt_ref[...])
    e_new = e + h                                                  # [E, De]
    out_edge_ref[...] = e_new

    # ---- scatter-add messages to destination nodes:  g_dst^T @ e'  (MXU) ----
    agg = jnp.dot(gdT_sc[...], e_new.astype(bf16),
                  preferred_element_type=f32)                      # [N, De]

    # ---- node update: x' = x + LN(W2 relu(W1 [x, agg] + b1) + b2) ----
    h = jnp.dot(xb, nw1x_ref[...], preferred_element_type=f32)
    h = h + jnp.dot(agg.astype(bf16), nw1a_ref[...], preferred_element_type=f32)
    h = h + nb1_ref[...]
    h = jnp.maximum(h, 0.0)
    h = jnp.dot(h.astype(bf16), nw2_ref[...], preferred_element_type=f32)
    h = h + nb2_ref[...]
    h = _layernorm(h, ng_ref[...], nbt_ref[...])
    out_node_ref[...] = x + h


# ----------------------------- wrapper -------------------------------------- #

def _pack_params(params, node_dim, edge_dim):
    """Split first-layer weights into row blocks and cast matmul weights to bf16."""
    bf = jnp.bfloat16
    ew1, nw1 = params["ew1"], params["nw1"]
    return dict(
        ew1s=ew1[:, :node_dim, :].astype(bf),
        ew1d=ew1[:, node_dim:2 * node_dim, :].astype(bf),
        ew1e=ew1[:, 2 * node_dim:, :].astype(bf),
        eb1=params["eb1"],
        ew2=params["ew2"].astype(bf), eb2=params["eb2"],
        eg=params["eg"], ebt=params["ebt"],
        nw1x=nw1[:, :node_dim, :].astype(bf),
        nw1a=nw1[:, node_dim:, :].astype(bf),
        nb1=params["nb1"],
        nw2=params["nw2"].astype(bf), nb2=params["nb2"],
        ng=params["ng"], nbt=params["nbt"],
    )


def processor_forward(h_node, edge_index, h_edge, params):
    """Runs all `num_convs` MeshGraphNetsConv layers in one pallas_call (grid over layers)."""
    N, Dn = h_node.shape
    E, De = h_edge.shape
    L = params["ew1"].shape[0]

    src = edge_index[0].astype(jnp.int32).reshape(E, 1)
    dst = edge_index[1].astype(jnp.int32).reshape(E, 1)
    dst_row = edge_index[1].astype(jnp.int32).reshape(1, E)

    kp = _pack_params(params, Dn, De)
    inputs = (src, dst, dst_row, h_node, h_edge,
              kp["ew1s"], kp["ew1d"], kp["ew1e"], kp["eb1"],
              kp["ew2"], kp["eb2"], kp["eg"], kp["ebt"],
              kp["nw1x"], kp["nw1a"], kp["nb1"],
              kp["nw2"], kp["nb2"], kp["ng"], kp["nbt"])

    def const_spec(a):          # loaded once; block index constant across layers
        nd = a.ndim
        return pl.BlockSpec(a.shape, lambda l, _nd=nd: (0,) * _nd)

    def layer_spec(a):          # one layer's weights per grid step (pipelined DMA)
        return pl.BlockSpec((None,) + a.shape[1:], lambda l: (l, 0, 0))

    in_specs = [const_spec(a) for a in inputs[:5]] + [layer_spec(a) for a in inputs[5:]]

    flops_layer = (
        2 * (2 * N * Dn * De)          # per-endpoint projections of x
        + 2 * (E * 2 * N * De)         # fused one-hot gather
        + 2 * (E * De * De) * 2        # edge MLP (e-part of linear1) + linear2
        + 2 * (N * E * De)             # one-hot scatter-add
        + 2 * (N * Dn * Dn) * 2        # node MLP x-part of linear1 + linear2
        + 2 * (N * De * Dn)            # node MLP agg-part of linear1
    )
    bytes_accessed = sum(int(a.size) * a.dtype.itemsize for a in inputs)
    bytes_accessed += (N * Dn + E * De) * 4
    cost = pl.CostEstimate(flops=int(L * flops_layer),
                           transcendentals=int(L * (E + N)),
                           bytes_accessed=int(bytes_accessed))

    return pl.pallas_call(
        _processor_kernel,
        grid_spec=pltpu.PrefetchScalarGridSpec(
            num_scalar_prefetch=0,
            grid=(L,),
            in_specs=in_specs,
            out_specs=(pl.BlockSpec((N, Dn), lambda l: (0, 0)),
                       pl.BlockSpec((E, De), lambda l: (0, 0))),
            scratch_shapes=[pltpu.VMEM((E, 2 * N), jnp.bfloat16),   # [g_src | g_dst]
                            pltpu.VMEM((N, E), jnp.bfloat16)],      # g_dst^T
        ),
        out_shape=(jax.ShapeDtypeStruct((N, Dn), jnp.float32),
                   jax.ShapeDtypeStruct((E, De), jnp.float32)),
        compiler_params=pltpu.CompilerParams(
            dimension_semantics=("arbitrary",),        # layer loop is sequential
            vmem_limit_bytes=32 * 1024 * 1024),
        cost_estimate=cost,
    )(*inputs)


# ----------------------------- parameters ----------------------------------- #

def init_params(key, node_dim, edge_dim, num_convs):
    """Deterministic init mimicking nn.Linear defaults (uniform +-1/sqrt(fan_in))."""
    def linear(k, fan_in, fan_out):
        k1, k2 = jax.random.split(k)
        bound = 1.0 / float(fan_in) ** 0.5
        w = jax.random.uniform(k1, (fan_in, fan_out), jnp.float32, -bound, bound)
        b = jax.random.uniform(k2, (1, fan_out), jnp.float32, -bound, bound)
        return w, b

    ew1, eb1, ew2, eb2, nw1, nb1, nw2, nb2 = [], [], [], [], [], [], [], []
    keys = jax.random.split(key, num_convs)
    for k in keys:
        k1, k2, k3, k4 = jax.random.split(k, 4)
        w, b = linear(k1, 2 * node_dim + edge_dim, edge_dim); ew1.append(w); eb1.append(b)
        w, b = linear(k2, edge_dim, edge_dim);                ew2.append(w); eb2.append(b)
        w, b = linear(k3, node_dim + edge_dim, node_dim);     nw1.append(w); nb1.append(b)
        w, b = linear(k4, node_dim, node_dim);                nw2.append(w); nb2.append(b)

    stack = lambda xs: jnp.stack(xs, axis=0)
    return {
        "ew1": stack(ew1), "eb1": stack(eb1), "ew2": stack(ew2), "eb2": stack(eb2),
        "eg": jnp.ones((num_convs, 1, edge_dim), jnp.float32),
        "ebt": jnp.zeros((num_convs, 1, edge_dim), jnp.float32),
        "nw1": stack(nw1), "nb1": stack(nb1), "nw2": stack(nw2), "nb2": stack(nb2),
        "ng": jnp.ones((num_convs, 1, node_dim), jnp.float32),
        "nbt": jnp.zeros((num_convs, 1, node_dim), jnp.float32),
    }


# ----------------------------- pure-JAX reference ---------------------------- #

def processor_reference(h_node, edge_index, h_edge, params):
    """f32 reference matching the PyTorch module semantics."""
    src, dst = edge_index[0], edge_index[1]
    x, e = h_node, h_edge
    N = x.shape[0]
    L = params["ew1"].shape[0]
    for l in range(L):
        ein = jnp.concatenate([x[src], x[dst], e], axis=-1)
        h = jnp.maximum(ein @ params["ew1"][l] + params["eb1"][l], 0.0)
        h = h @ params["ew2"][l] + params["eb2"][l]
        h = _layernorm(h, params["eg"][l], params["ebt"][l])
        e = e + h
        agg = jnp.zeros((N, e.shape[-1]), jnp.float32).at[dst].add(e)
        nin = jnp.concatenate([x, agg], axis=-1)
        h = jnp.maximum(nin @ params["nw1"][l] + params["nb1"][l], 0.0)
        h = h @ params["nw2"][l] + params["nb2"][l]
        h = _layernorm(h, params["ng"][l], params["nbt"][l])
        x = x + h
    return x, e


# ----------------------------- main ------------------------------------------ #

if __name__ == "__main__":
    node_dim, edge_dim = 32, 32
    num_nodes, num_edges = 8, 16
    num_convs = 15  # module default

    key = jax.random.PRNGKey(0)
    k_param, k_node, k_edge, k_idx = jax.random.split(key, 4)

    params = init_params(k_param, node_dim, edge_dim, num_convs)
    h_node = jax.random.normal(k_node, (num_nodes, node_dim), jnp.float32)
    h_edge = jax.random.normal(k_edge, (num_edges, edge_dim), jnp.float32)
    edge_index = jax.random.randint(k_idx, (2, num_edges), 0, num_nodes, jnp.int32)

    out_node, out_edge = processor_forward(h_node, edge_index, h_edge, params)
    jax.block_until_ready((out_node, out_edge))

    ref_node, ref_edge = processor_reference(h_node, edge_index, h_edge, params)

    # Kernel uses bf16 MXU inputs with f32 accumulation over 15 residual layers;
    # compare to the pure-f32 reference with tolerances sized for that gap
    # (structural bugs would produce O(1) relative error).
    def rel_err(a, b):
        return float(jnp.linalg.norm(a - b) / (jnp.linalg.norm(b) + 1e-12))

    assert rel_err(out_node, ref_node) < 5e-2, rel_err(out_node, ref_node)
    assert rel_err(out_edge, ref_edge) < 5e-2, rel_err(out_edge, ref_edge)
    assert jnp.allclose(out_node, ref_node, atol=1e-1, rtol=1e-1)
    assert jnp.allclose(out_edge, ref_edge, atol=1e-1, rtol=1e-1)

    print("KERNEL_OK")
</pallas_src>

<mosaic_0001>
module attributes {stable_mosaic.version = 11 : i64} {
  func.func @_processor_kernel(%arg0: i32, %arg1: memref<16x1xi32, #tpu.memory_space<vmem>>, %arg2: memref<16x1xi32, #tpu.memory_space<vmem>>, %arg3: memref<1x16xi32, #tpu.memory_space<vmem>>, %arg4: memref<8x32xf32, #tpu.memory_space<vmem>>, %arg5: memref<16x32xf32, #tpu.memory_space<vmem>>, %arg6: memref<1x32x32xbf16, #tpu.memory_space<vmem>>, %arg7: memref<1x32x32xbf16, #tpu.memory_space<vmem>>, %arg8: memref<1x32x32xbf16, #tpu.memory_space<vmem>>, %arg9: memref<1x1x32xf32, #tpu.memory_space<vmem>>, %arg10: memref<1x32x32xbf16, #tpu.memory_space<vmem>>, %arg11: memref<1x1x32xf32, #tpu.memory_space<vmem>>, %arg12: memref<1x1x32xf32, #tpu.memory_space<vmem>>, %arg13: memref<1x1x32xf32, #tpu.memory_space<vmem>>, %arg14: memref<1x32x32xbf16, #tpu.memory_space<vmem>>, %arg15: memref<1x32x32xbf16, #tpu.memory_space<vmem>>, %arg16: memref<1x1x32xf32, #tpu.memory_space<vmem>>, %arg17: memref<1x32x32xbf16, #tpu.memory_space<vmem>>, %arg18: memref<1x1x32xf32, #tpu.memory_space<vmem>>, %arg19: memref<1x1x32xf32, #tpu.memory_space<vmem>>, %arg20: memref<1x1x32xf32, #tpu.memory_space<vmem>>, %arg21: memref<8x32xf32, #tpu.memory_space<vmem>>, %arg22: memref<16x32xf32, #tpu.memory_space<vmem>>, %arg23: memref<16x16xbf16, #tpu.memory_space<vmem>>, %arg24: memref<8x16xbf16, #tpu.memory_space<vmem>>) attributes {dimension_semantics = [#tpu.dimension_semantics<arbitrary>], iteration_bounds = array<i64: 15>, scalar_prefetch = 0 : i64, scratch_operands = 2 : i64, tpu.core_type = #tpu.core_type<tc>, window_params = [{pipeline_mode = #tpu.pipeline_mode<synchronous>, transform_indices = @transform_0, window_bounds = array<i64: 16, 1>}, {pipeline_mode = #tpu.pipeline_mode<synchronous>, transform_indices = @transform_1, window_bounds = array<i64: 16, 1>}, {pipeline_mode = #tpu.pipeline_mode<synchronous>, transform_indices = @transform_2, window_bounds = array<i64: 1, 16>}, {pipeline_mode = #tpu.pipeline_mode<synchronous>, transform_indices = @transform_3, window_bounds = array<i64: 8, 32>}, {pipeline_mode = #tpu.pipeline_mode<synchronous>, transform_indices = @transform_4, window_bounds = array<i64: 16, 32>}, {transform_indices = @transform_5, window_bounds = array<i64: 1, 32, 32>}, {transform_indices = @transform_6, window_bounds = array<i64: 1, 32, 32>}, {transform_indices = @transform_7, window_bounds = array<i64: 1, 32, 32>}, {transform_indices = @transform_8, window_bounds = array<i64: 1, 1, 32>}, {transform_indices = @transform_9, window_bounds = array<i64: 1, 32, 32>}, {transform_indices = @transform_10, window_bounds = array<i64: 1, 1, 32>}, {transform_indices = @transform_11, window_bounds = array<i64: 1, 1, 32>}, {transform_indices = @transform_12, window_bounds = array<i64: 1, 1, 32>}, {transform_indices = @transform_13, window_bounds = array<i64: 1, 32, 32>}, {transform_indices = @transform_14, window_bounds = array<i64: 1, 32, 32>}, {transform_indices = @transform_15, window_bounds = array<i64: 1, 1, 32>}, {transform_indices = @transform_16, window_bounds = array<i64: 1, 32, 32>}, {transform_indices = @transform_17, window_bounds = array<i64: 1, 1, 32>}, {transform_indices = @transform_18, window_bounds = array<i64: 1, 1, 32>}, {transform_indices = @transform_19, window_bounds = array<i64: 1, 1, 32>}, {pipeline_mode = #tpu.pipeline_mode<synchronous>, transform_indices = @transform_20, window_bounds = array<i64: 8, 32>}, {pipeline_mode = #tpu.pipeline_mode<synchronous>, transform_indices = @transform_21, window_bounds = array<i64: 16, 32>}]} {
    %c0_i32 = arith.constant 0 : i32
    %0 = arith.cmpi eq, %arg0, %c0_i32 : i32
    %1 = arith.extui %0 : i1 to i32
    %c0_i32_0 = arith.constant 0 : i32
    %2 = arith.cmpi ne, %1, %c0_i32_0 : i32
    scf.if %2 {
      %c0_77 = arith.constant 0 : index
      %c0_78 = arith.constant 0 : index
      %116 = vector.load %arg4[%c0_77, %c0_78] : memref<8x32xf32, #tpu.memory_space<vmem>>, vector<8x32xf32>
      %c0_79 = arith.constant 0 : index
      %c0_80 = arith.constant 0 : index
      %117 = vector.load %arg21[%c0_79, %c0_80] : memref<8x32xf32, #tpu.memory_space<vmem>>, vector<8x32xf32>
      tpu.vector_store %arg21[%c0_79, %c0_80], %116 {strides = array<i32>} : memref<8x32xf32, #tpu.memory_space<vmem>>, vector<8x32xf32>,
      %c0_81 = arith.constant 0 : index
      %c0_82 = arith.constant 0 : index
      %118 = vector.load %arg5[%c0_81, %c0_82] : memref<16x32xf32, #tpu.memory_space<vmem>>, vector<16x32xf32>
      %c0_83 = arith.constant 0 : index
      %c0_84 = arith.constant 0 : index
      %119 = vector.load %arg22[%c0_83, %c0_84] : memref<16x32xf32, #tpu.memory_space<vmem>>, vector<16x32xf32>
      tpu.vector_store %arg22[%c0_83, %c0_84], %118 {strides = array<i32>} : memref<16x32xf32, #tpu.memory_space<vmem>>, vector<16x32xf32>,
      %120 = tpu.iota {dimensions = array<i32: 1>} : vector<16x16xi32>
      %c8_i32 = arith.constant 8 : i32
      %121 = vector.broadcast %c8_i32 : i32 to vector<16x16xi32>
      %122 = arith.cmpi slt, %120, %121 : vector<16x16xi32>
      %c0_85 = arith.constant 0 : index
      %c0_86 = arith.constant 0 : index
      %123 = vector.load %arg1[%c0_85, %c0_86] : memref<16x1xi32, #tpu.memory_space<vmem>>, vector<16x1xi32>
      %124 = vector.broadcast %123 : vector<16x1xi32> to vector<16x16xi32>
      %125 = arith.cmpi eq, %124, %120 : vector<16x16xi32>
      %126 = arith.extui %125 : vector<16x16xi1> to vector<16x16xi32>
      %127 = arith.sitofp %126 : vector<16x16xi32> to vector<16x16xf32>
      %c0_87 = arith.constant 0 : index
      %c0_88 = arith.constant 0 : index
      %128 = vector.load %arg2[%c0_87, %c0_88] : memref<16x1xi32, #tpu.memory_space<vmem>>, vector<16x1xi32>
      %c8_i32_89 = arith.constant 8 : i32
      %129 = vector.broadcast %c8_i32_89 : i32 to vector<16x16xi32>
      %130 = arith.subi %120, %129 : vector<16x16xi32>
      %131 = vector.broadcast %128 : vector<16x1xi32> to vector<16x16xi32>
      %132 = arith.cmpi eq, %131, %130 : vector<16x16xi32>
      %133 = arith.extui %132 : vector<16x16xi1> to vector<16x16xi32>
      %134 = arith.sitofp %133 : vector<16x16xi32> to vector<16x16xf32>
      %135 = arith.select %122, %127, %134 : vector<16x16xi1>, vector<16x16xf32>
      %136 = arith.truncf %135 : vector<16x16xf32> to vector<16x16xbf16>
      %c0_90 = arith.constant 0 : index
      %c0_91 = arith.constant 0 : index
      %137 = vector.load %arg23[%c0_90, %c0_91] : memref<16x16xbf16, #tpu.memory_space<vmem>>, vector<16x16xbf16>
      tpu.vector_store %arg23[%c0_90, %c0_91], %136 {strides = array<i32>} : memref<16x16xbf16, #tpu.memory_space<vmem>>, vector<16x16xbf16>,
      %138 = tpu.iota {dimensions = array<i32: 0>} : vector<8x16xi32>
      %c0_92 = arith.constant 0 : index
      %c0_93 = arith.constant 0 : index
      %139 = vector.load %arg3[%c0_92, %c0_93] : memref<1x16xi32, #tpu.memory_space<vmem>>, vector<1x16xi32>
      %140 = vector.broadcast %139 : vector<1x16xi32> to vector<8x16xi32>
      %141 = arith.cmpi eq, %140, %138 : vector<8x16xi32>
      %142 = arith.extui %141 : vector<8x16xi1> to vector<8x16xi32>
      %143 = arith.sitofp %142 : vector<8x16xi32> to vector<8x16xf32>
      %144 = arith.truncf %143 : vector<8x16xf32> to vector<8x16xbf16>
      %c0_94 = arith.constant 0 : index
      %c0_95 = arith.constant 0 : index
      %145 = vector.load %arg24[%c0_94, %c0_95] : memref<8x16xbf16, #tpu.memory_space<vmem>>, vector<8x16xbf16>
      tpu.vector_store %arg24[%c0_94, %c0_95], %144 {strides = array<i32>} : memref<8x16xbf16, #tpu.memory_space<vmem>>, vector<8x16xbf16>,
    } else {
    }
    %c0 = arith.constant 0 : index
    %c0_1 = arith.constant 0 : index
    %3 = vector.load %arg21[%c0, %c0_1] : memref<8x32xf32, #tpu.memory_space<vmem>>, vector<8x32xf32>
    %c0_2 = arith.constant 0 : index
    %c0_3 = arith.constant 0 : index
    %4 = vector.load %arg22[%c0_2, %c0_3] : memref<16x32xf32, #tpu.memory_space<vmem>>, vector<16x32xf32>
    %5 = arith.truncf %3 : vector<8x32xf32> to vector<8x32xbf16>
    %c0_4 = arith.constant 0 : index
    %c0_5 = arith.constant 0 : index
    %c0_6 = arith.constant 0 : index
    %6 = vector.load %arg6[%c0_4, %c0_5, %c0_6] : memref<1x32x32xbf16, #tpu.memory_space<vmem>>, vector<1x32x32xbf16>
    %7 = vector.shape_cast %6 : vector<1x32x32xbf16> to vector<32x32xbf16>
    %cst = arith.constant dense<0.000000e+00> : vector<8x32xf32>
    %8 = tpu.matmul %5, %7, %cst {dimension_numbers = #tpu.dot_dimension_numbers<[1], [0], [0], [1], [0, 0, 1, 1], [], []>} : vector<8x32xbf16>, vector<32x32xbf16>, vector<8x32xf32> -> vector<8x32xf32>
    %c0_7 = arith.constant 0 : index
    %c0_8 = arith.constant 0 : index
    %c0_9 = arith.constant 0 : index
    %9 = vector.load %arg7[%c0_7, %c0_8, %c0_9] : memref<1x32x32xbf16, #tpu.memory_space<vmem>>, vector<1x32x32xbf16>
    %10 = vector.shape_cast %9 : vector<1x32x32xbf16> to vector<32x32xbf16>
    %cst_10 = arith.constant dense<0.000000e+00> : vector<8x32xf32>
    %11 = tpu.matmul %5, %10, %cst_10 {dimension_numbers = #tpu.dot_dimension_numbers<[1], [0], [0], [1], [0, 0, 1, 1], [], []>} : vector<8x32xbf16>, vector<32x32xbf16>, vector<8x32xf32> -> vector<8x32xf32>
    %12 = tpu.concatenate %8, %11 in 0 : vector<8x32xf32>, vector<8x32xf32> -> vector<16x32xf32>
    %13 = arith.truncf %12 : vector<16x32xf32> to vector<16x32xbf16>
    %c0_11 = arith.constant 0 : index
    %c0_12 = arith.constant 0 : index
    %14 = vector.load %arg23[%c0_11, %c0_12] : memref<16x16xbf16, #tpu.memory_space<vmem>>, vector<16x16xbf16>
    %cst_13 = arith.constant dense<0.000000e+00> : vector<16x32xf32>
    %15 = tpu.matmul %14, %13, %cst_13 {dimension_numbers = #tpu.dot_dimension_numbers<[1], [0], [0], [1], [0, 0, 1, 1], [], []>} : vector<16x16xbf16>, vector<16x32xbf16>, vector<16x32xf32> -> vector<16x32xf32>
    %16 = arith.truncf %4 : vector<16x32xf32> to vector<16x32xbf16>
    %c0_14 = arith.constant 0 : index
    %c0_15 = arith.constant 0 : index
    %c0_16 = arith.constant 0 : index
    %17 = vector.load %arg8[%c0_14, %c0_15, %c0_16] : memref<1x32x32xbf16, #tpu.memory_space<vmem>>, vector<1x32x32xbf16>
    %18 = vector.shape_cast %17 : vector<1x32x32xbf16> to vector<32x32xbf16>
    %cst_17 = arith.constant dense<0.000000e+00> : vector<16x32xf32>
    %19 = tpu.matmul %16, %18, %cst_17 {dimension_numbers = #tpu.dot_dimension_numbers<[1], [0], [0], [1], [0, 0, 1, 1], [], []>} : vector<16x32xbf16>, vector<32x32xbf16>, vector<16x32xf32> -> vector<16x32xf32>
    %20 = arith.addf %15, %19 : vector<16x32xf32>
    %c0_18 = arith.constant 0 : index
    %c0_19 = arith.constant 0 : index
    %c0_20 = arith.constant 0 : index
    %21 = vector.load %arg9[%c0_18, %c0_19, %c0_20] : memref<1x1x32xf32, #tpu.memory_space<vmem>>, vector<1x1x32xf32>
    %22 = vector.shape_cast %21 : vector<1x1x32xf32> to vector<1x32xf32>
    %23 = vector.broadcast %22 : vector<1x32xf32> to vector<16x32xf32>
    %24 = arith.addf %20, %23 : vector<16x32xf32>
    %cst_21 = arith.constant 0.000000e+00 : f32
    %25 = vector.broadcast %cst_21 : f32 to vector<16x32xf32>
    %26 = arith.maximumf %24, %25 : vector<16x32xf32>
    %27 = arith.truncf %26 : vector<16x32xf32> to vector<16x32xbf16>
    %c0_22 = arith.constant 0 : index
    %c0_23 = arith.constant 0 : index
    %c0_24 = arith.constant 0 : index
    %28 = vector.load %arg10[%c0_22, %c0_23, %c0_24] : memref<1x32x32xbf16, #tpu.memory_space<vmem>>, vector<1x32x32xbf16>
    %29 = vector.shape_cast %28 : vector<1x32x32xbf16> to vector<32x32xbf16>
    %cst_25 = arith.constant dense<0.000000e+00> : vector<16x32xf32>
    %30 = tpu.matmul %27, %29, %cst_25 {dimension_numbers = #tpu.dot_dimension_numbers<[1], [0], [0], [1], [0, 0, 1, 1], [], []>} : vector<16x32xbf16>, vector<32x32xbf16>, vector<16x32xf32> -> vector<16x32xf32>
    %c0_26 = arith.constant 0 : index
    %c0_27 = arith.constant 0 : index
    %c0_28 = arith.constant 0 : index
    %31 = vector.load %arg11[%c0_26, %c0_27, %c0_28] : memref<1x1x32xf32, #tpu.memory_space<vmem>>, vector<1x1x32xf32>
    %32 = vector.shape_cast %31 : vector<1x1x32xf32> to vector<1x32xf32>
    %33 = vector.broadcast %32 : vector<1x32xf32> to vector<16x32xf32>
    %34 = arith.addf %30, %33 : vector<16x32xf32>
    %c0_29 = arith.constant 0 : index
    %c0_30 = arith.constant 0 : index
    %c0_31 = arith.constant 0 : index
    %35 = vector.load %arg12[%c0_29, %c0_30, %c0_31] : memref<1x1x32xf32, #tpu.memory_space<vmem>>, vector<1x1x32xf32>
    %36 = vector.shape_cast %35 : vector<1x1x32xf32> to vector<1x32xf32>
    %c0_32 = arith.constant 0 : index
    %c0_33 = arith.constant 0 : index
    %c0_34 = arith.constant 0 : index
    %37 = vector.load %arg13[%c0_32, %c0_33, %c0_34] : memref<1x1x32xf32, #tpu.memory_space<vmem>>, vector<1x1x32xf32>
    %38 = vector.shape_cast %37 : vector<1x1x32xf32> to vector<1x32xf32>
    %cst_35 = arith.constant dense<0.000000e+00> : vector<16xf32>
    %39 = vector.multi_reduction <add>, %34, %cst_35 [1] : vector<16x32xf32> to vector<16xf32>
    %40 = vector.shape_cast %39 : vector<16xf32> to vector<16x1xf32>
    %cst_36 = arith.constant 3.200000e+01 : f32
    %41 = vector.broadcast %cst_36 : f32 to vector<16x1xf32>
    %42 = arith.divf %40, %41 : vector<16x1xf32>
    %43 = vector.broadcast %42 : vector<16x1xf32> to vector<16x32xf32>
    %44 = arith.subf %34, %43 : vector<16x32xf32>
    %45 = arith.mulf %44, %44 : vector<16x32xf32>
    %cst_37 = arith.constant dense<0.000000e+00> : vector<16xf32>
    %46 = vector.multi_reduction <add>, %45, %cst_37 [1] : vector<16x32xf32> to vector<16xf32>
    %47 = vector.shape_cast %46 : vector<16xf32> to vector<16x1xf32>
    %cst_38 = arith.constant 3.200000e+01 : f32
    %48 = vector.broadcast %cst_38 : f32 to vector<16x1xf32>
    %49 = arith.divf %47, %48 : vector<16x1xf32>
    %50 = vector.broadcast %42 : vector<16x1xf32> to vector<16x32xf32>
    %51 = arith.subf %34, %50 : vector<16x32xf32>
    %cst_39 = arith.constant 9.99999974E-6 : f32
    %52 = vector.broadcast %cst_39 : f32 to vector<16x1xf32>
    %53 = arith.addf %49, %52 : vector<16x1xf32>
    %54 = math.rsqrt %53 : vector<16x1xf32>
    %55 = vector.broadcast %54 : vector<16x1xf32> to vector<16x32xf32>
    %56 = arith.mulf %51, %55 : vector<16x32xf32>
    %57 = vector.broadcast %36 : vector<1x32xf32> to vector<16x32xf32>
    %58 = arith.mulf %56, %57 : vector<16x32xf32>
    %59 = vector.broadcast %38 : vector<1x32xf32> to vector<16x32xf32>
    %60 = arith.addf %58, %59 : vector<16x32xf32>
    %61 = arith.addf %4, %60 : vector<16x32xf32>
    %c0_40 = arith.constant 0 : index
    %c0_41 = arith.constant 0 : index
    %62 = vector.load %arg22[%c0_40, %c0_41] : memref<16x32xf32, #tpu.memory_space<vmem>>, vector<16x32xf32>
    tpu.vector_store %arg22[%c0_40, %c0_41], %61 {strides = array<i32>} : memref<16x32xf32, #tpu.memory_space<vmem>>, vector<16x32xf32>,
    %c0_42 = arith.constant 0 : index
    %c0_43 = arith.constant 0 : index
    %63 = vector.load %arg24[%c0_42, %c0_43] : memref<8x16xbf16, #tpu.memory_space<vmem>>, vector<8x16xbf16>
    %64 = arith.truncf %61 : vector<16x32xf32> to vector<16x32xbf16>
    %cst_44 = arith.constant dense<0.000000e+00> : vector<8x32xf32>
    %65 = tpu.matmul %63, %64, %cst_44 {dimension_numbers = #tpu.dot_dimension_numbers<[1], [0], [0], [1], [0, 0, 1, 1], [], []>} : vector<8x16xbf16>, vector<16x32xbf16>, vector<8x32xf32> -> vector<8x32xf32>
    %c0_45 = arith.constant 0 : index
    %c0_46 = arith.constant 0 : index
    %c0_47 = arith.constant 0 : index
    %66 = vector.load %arg14[%c0_45, %c0_46, %c0_47] : memref<1x32x32xbf16, #tpu.memory_space<vmem>>, vector<1x32x32xbf16>
    %67 = vector.shape_cast %66 : vector<1x32x32xbf16> to vector<32x32xbf16>
    %cst_48 = arith.constant dense<0.000000e+00> : vector<8x32xf32>
    %68 = tpu.matmul %5, %67, %cst_48 {dimension_numbers = #tpu.dot_dimension_numbers<[1], [0], [0], [1], [0, 0, 1, 1], [], []>} : vector<8x32xbf16>, vector<32x32xbf16>, vector<8x32xf32> -> vector<8x32xf32>
    %69 = arith.truncf %65 : vector<8x32xf32> to vector<8x32xbf16>
    %c0_49 = arith.constant 0 : index
    %c0_50 = arith.constant 0 : index
    %c0_51 = arith.constant 0 : index
    %70 = vector.load %arg15[%c0_49, %c0_50, %c0_51] : memref<1x32x32xbf16, #tpu.memory_space<vmem>>, vector<1x32x32xbf16>
    %71 = vector.shape_cast %70 : vector<1x32x32xbf16> to vector<32x32xbf16>
    %cst_52 = arith.constant dense<0.000000e+00> : vector<8x32xf32>
    %72 = tpu.matmul %69, %71, %cst_52 {dimension_numbers = #tpu.dot_dimension_numbers<[1], [0], [0], [1], [0, 0, 1, 1], [], []>} : vector<8x32xbf16>, vector<32x32xbf16>, vector<8x32xf32> -> vector<8x32xf32>
    %73 = arith.addf %68, %72 : vector<8x32xf32>
    %c0_53 = arith.constant 0 : index
    %c0_54 = arith.constant 0 : index
    %c0_55 = arith.constant 0 : index
    %74 = vector.load %arg16[%c0_53, %c0_54, %c0_55] : memref<1x1x32xf32, #tpu.memory_space<vmem>>, vector<1x1x32xf32>
    %75 = vector.shape_cast %74 : vector<1x1x32xf32> to vector<1x32xf32>
    %76 = vector.broadcast %75 : vector<1x32xf32> to vector<8x32xf32>
    %77 = arith.addf %73, %76 : vector<8x32xf32>
    %cst_56 = arith.constant 0.000000e+00 : f32
    %78 = vector.broadcast %cst_56 : f32 to vector<8x32xf32>
    %79 = arith.maximumf %77, %78 : vector<8x32xf32>
    %80 = arith.truncf %79 : vector<8x32xf32> to vector<8x32xbf16>
    %c0_57 = arith.constant 0 : index
    %c0_58 = arith.constant 0 : index
    %c0_59 = arith.constant 0 : index
    %81 = vector.load %arg17[%c0_57, %c0_58, %c0_59] : memref<1x32x32xbf16, #tpu.memory_space<vmem>>, vector<1x32x32xbf16>
    %82 = vector.shape_cast %81 : vector<1x32x32xbf16> to vector<32x32xbf16>
    %cst_60 = arith.constant dense<0.000000e+00> : vector<8x32xf32>
    %83 = tpu.matmul %80, %82, %cst_60 {dimension_numbers = #tpu.dot_dimension_numbers<[1], [0], [0], [1], [0, 0, 1, 1], [], []>} : vector<8x32xbf16>, vector<32x32xbf16>, vector<8x32xf32> -> vector<8x32xf32>
    %c0_61 = arith.constant 0 : index
    %c0_62 = arith.constant 0 : index
    %c0_63 = arith.constant 0 : index
    %84 = vector.load %arg18[%c0_61, %c0_62, %c0_63] : memref<1x1x32xf32, #tpu.memory_space<vmem>>, vector<1x1x32xf32>
    %85 = vector.shape_cast %84 : vector<1x1x32xf32> to vector<1x32xf32>
    %86 = vector.broadcast %85 : vector<1x32xf32> to vector<8x32xf32>
    %87 = arith.addf %83, %86 : vector<8x32xf32>
    %c0_64 = arith.constant 0 : index
    %c0_65 = arith.constant 0 : index
    %c0_66 = arith.constant 0 : index
    %88 = vector.load %arg19[%c0_64, %c0_65, %c0_66] : memref<1x1x32xf32, #tpu.memory_space<vmem>>, vector<1x1x32xf32>
    %89 = vector.shape_cast %88 : vector<1x1x32xf32> to vector<1x32xf32>
    %c0_67 = arith.constant 0 : index
    %c0_68 = arith.constant 0 : index
    %c0_69 = arith.constant 0 : index
    %90 = vector.load %arg20[%c0_67, %c0_68, %c0_69] : memref<1x1x32xf32, #tpu.memory_space<vmem>>, vector<1x1x32xf32>
    %91 = vector.shape_cast %90 : vector<1x1x32xf32> to vector<1x32xf32>
    %cst_70 = arith.constant dense<0.000000e+00> : vector<8xf32>
    %92 = vector.multi_reduction <add>, %87, %cst_70 [1] : vector<8x32xf32> to vector<8xf32>
    %93 = vector.shape_cast %92 : vector<8xf32> to vector<8x1xf32>
    %cst_71 = arith.constant 3.200000e+01 : f32
    %94 = vector.broadcast %cst_71 : f32 to vector<8x1xf32>
    %95 = arith.divf %93, %94 : vector<8x1xf32>
    %96 = vector.broadcast %95 : vector<8x1xf32> to vector<8x32xf32>
    %97 = arith.subf %87, %96 : vector<8x32xf32>
    %98 = arith.mulf %97, %97 : vector<8x32xf32>
    %cst_72 = arith.constant dense<0.000000e+00> : vector<8xf32>
    %99 = vector.multi_reduction <add>, %98, %cst_72 [1] : vector<8x32xf32> to vector<8xf32>
    %100 = vector.shape_cast %99 : vector<8xf32> to vector<8x1xf32>
    %cst_73 = arith.constant 3.200000e+01 : f32
    %101 = vector.broadcast %cst_73 : f32 to vector<8x1xf32>
    %102 = arith.divf %100, %101 : vector<8x1xf32>
    %103 = vector.broadcast %95 : vector<8x1xf32> to vector<8x32xf32>
    %104 = arith.subf %87, %103 : vector<8x32xf32>
    %cst_74 = arith.constant 9.99999974E-6 : f32
    %105 = vector.broadcast %cst_74 : f32 to vector<8x1xf32>
    %106 = arith.addf %102, %105 : vector<8x1xf32>
    %107 = math.rsqrt %106 : vector<8x1xf32>
    %108 = vector.broadcast %107 : vector<8x1xf32> to vector<8x32xf32>
    %109 = arith.mulf %104, %108 : vector<8x32xf32>
    %110 = vector.broadcast %89 : vector<1x32xf32> to vector<8x32xf32>
    %111 = arith.mulf %109, %110 : vector<8x32xf32>
    %112 = vector.broadcast %91 : vector<1x32xf32> to vector<8x32xf32>
    %113 = arith.addf %111, %112 : vector<8x32xf32>
    %114 = arith.addf %3, %113 : vector<8x32xf32>
    %c0_75 = arith.constant 0 : index
    %c0_76 = arith.constant 0 : index
    %115 = vector.load %arg21[%c0_75, %c0_76] : memref<8x32xf32, #tpu.memory_space<vmem>>, vector<8x32xf32>
    tpu.vector_store %arg21[%c0_75, %c0_76], %114 {strides = array<i32>} : memref<8x32xf32, #tpu.memory_space<vmem>>, vector<8x32xf32>,
    return
  }
  func.func @transform_0(%arg0: i32) -> (i32, i32) {
    %c0_i32 = arith.constant 0 : i32
    %c0_i32_0 = arith.constant 0 : i32
    %c0_i32_1 = arith.constant 0 : i32
    return %c0_i32, %c0_i32_0 : i32, i32
  }
  func.func @transform_1(%arg0: i32) -> (i32, i32) {
    %c0_i32 = arith.constant 0 : i32
    %c0_i32_0 = arith.constant 0 : i32
    %c0_i32_1 = arith.constant 0 : i32
    return %c0_i32, %c0_i32_0 : i32, i32
  }
  func.func @transform_2(%arg0: i32) -> (i32, i32) {
    %c0_i32 = arith.constant 0 : i32
    %c0_i32_0 = arith.constant 0 : i32
    %c0_i32_1 = arith.constant 0 : i32
    return %c0_i32, %c0_i32_0 : i32, i32
  }
  func.func @transform_3(%arg0: i32) -> (i32, i32) {
    %c0_i32 = arith.constant 0 : i32
    %c0_i32_0 = arith.constant 0 : i32
    %c0_i32_1 = arith.constant 0 : i32
    return %c0_i32, %c0_i32_0 : i32, i32
  }
  func.func @transform_4(%arg0: i32) -> (i32, i32) {
    %c0_i32 = arith.constant 0 : i32
    %c0_i32_0 = arith.constant 0 : i32
    %c0_i32_1 = arith.constant 0 : i32
    return %c0_i32, %c0_i32_0 : i32, i32
  }
  func.func @transform_5(%arg0: i32) -> (i32, i32, i32) {
    %c0_i32 = arith.constant 0 : i32
    %c0_i32_0 = arith.constant 0 : i32
    %c0_i32_1 = arith.constant 0 : i32
    return %arg0, %c0_i32, %c0_i32_0 : i32, i32, i32
  }
  func.func @transform_6(%arg0: i32) -> (i32, i32, i32) {
    %c0_i32 = arith.constant 0 : i32
    %c0_i32_0 = arith.constant 0 : i32
    %c0_i32_1 = arith.constant 0 : i32
    return %arg0, %c0_i32, %c0_i32_0 : i32, i32, i32
  }
  func.func @transform_7(%arg0: i32) -> (i32, i32, i32) {
    %c0_i32 = arith.constant 0 : i32
    %c0_i32_0 = arith.constant 0 : i32
    %c0_i32_1 = arith.constant 0 : i32
    return %arg0, %c0_i32, %c0_i32_0 : i32, i32, i32
  }
  func.func @transform_8(%arg0: i32) -> (i32, i32, i32) {
    %c0_i32 = arith.constant 0 : i32
    %c0_i32_0 = arith.constant 0 : i32
    %c0_i32_1 = arith.constant 0 : i32
    return %arg0, %c0_i32, %c0_i32_0 : i32, i32, i32
  }
  func.func @transform_9(%arg0: i32) -> (i32, i32, i32) {
    %c0_i32 = arith.constant 0 : i32
    %c0_i32_0 = arith.constant 0 : i32
    %c0_i32_1 = arith.constant 0 : i32
    return %arg0, %c0_i32, %c0_i32_0 : i32, i32, i32
  }
  func.func @transform_10(%arg0: i32) -> (i32, i32, i32) {
    %c0_i32 = arith.constant 0 : i32
    %c0_i32_0 = arith.constant 0 : i32
    %c0_i32_1 = arith.constant 0 : i32
    return %arg0, %c0_i32, %c0_i32_0 : i32, i32, i32
  }
  func.func @transform_11(%arg0: i32) -> (i32, i32, i32) {
    %c0_i32 = arith.constant 0 : i32
    %c0_i32_0 = arith.constant 0 : i32
    %c0_i32_1 = arith.constant 0 : i32
    return %arg0, %c0_i32, %c0_i32_0 : i32, i32, i32
  }
  func.func @transform_12(%arg0: i32) -> (i32, i32, i32) {
    %c0_i32 = arith.constant 0 : i32
    %c0_i32_0 = arith.constant 0 : i32
    %c0_i32_1 = arith.constant 0 : i32
    return %arg0, %c0_i32, %c0_i32_0 : i32, i32, i32
  }
  func.func @transform_13(%arg0: i32) -> (i32, i32, i32) {
    %c0_i32 = arith.constant 0 : i32
    %c0_i32_0 = arith.constant 0 : i32
    %c0_i32_1 = arith.constant 0 : i32
    return %arg0, %c0_i32, %c0_i32_0 : i32, i32, i32
  }
  func.func @transform_14(%arg0: i32) -> (i32, i32, i32) {
    %c0_i32 = arith.constant 0 : i32
    %c0_i32_0 = arith.constant 0 : i32
    %c0_i32_1 = arith.constant 0 : i32
    return %arg0, %c0_i32, %c0_i32_0 : i32, i32, i32
  }
  func.func @transform_15(%arg0: i32) -> (i32, i32, i32) {
    %c0_i32 = arith.constant 0 : i32
    %c0_i32_0 = arith.constant 0 : i32
    %c0_i32_1 = arith.constant 0 : i32
    return %arg0, %c0_i32, %c0_i32_0 : i32, i32, i32
  }
  func.func @transform_16(%arg0: i32) -> (i32, i32, i32) {
    %c0_i32 = arith.constant 0 : i32
    %c0_i32_0 = arith.constant 0 : i32
    %c0_i32_1 = arith.constant 0 : i32
    return %arg0, %c0_i32, %c0_i32_0 : i32, i32, i32
  }
  func.func @transform_17(%arg0: i32) -> (i32, i32, i32) {
    %c0_i32 = arith.constant 0 : i32
    %c0_i32_0 = arith.constant 0 : i32
    %c0_i32_1 = arith.constant 0 : i32
    return %arg0, %c0_i32, %c0_i32_0 : i32, i32, i32
  }
  func.func @transform_18(%arg0: i32) -> (i32, i32, i32) {
    %c0_i32 = arith.constant 0 : i32
    %c0_i32_0 = arith.constant 0 : i32
    %c0_i32_1 = arith.constant 0 : i32
    return %arg0, %c0_i32, %c0_i32_0 : i32, i32, i32
  }
  func.func @transform_19(%arg0: i32) -> (i32, i32, i32) {
    %c0_i32 = arith.constant 0 : i32
    %c0_i32_0 = arith.constant 0 : i32
    %c0_i32_1 = arith.constant 0 : i32
    return %arg0, %c0_i32, %c0_i32_0 : i32, i32, i32
  }
  func.func @transform_20(%arg0: i32) -> (i32, i32) {
    %c0_i32 = arith.constant 0 : i32
    %c0_i32_0 = arith.constant 0 : i32
    %c0_i32_1 = arith.constant 0 : i32
    return %c0_i32, %c0_i32_0 : i32, i32
  }
  func.func @transform_21(%arg0: i32) -> (i32, i32) {
    %c0_i32 = arith.constant 0 : i32
    %c0_i32_0 = arith.constant 0 : i32
    %c0_i32_1 = arith.constant 0 : i32
    return %c0_i32, %c0_i32_0 : i32, i32
  }
}

</mosaic_0001>

<bundles_post_ra>
// kernel: tpu_custom_call.1
= control target key start
LH: loop header
LB: loop body
LE: loop exit
PB: predicated region body
PF: predicated region fallthrough
CT: control target
= control target key end

     0   :  { %s3688_s0 = inlined_call_operand.vmem [shape: s32[16,1], index: 0, kind: input, shape index: {}]   ;;  %s3689_s1 = inlined_call_operand.vmem [shape: s32[16,1], index: 1, kind: input, shape index: {}]   ;;  %s3690_s2 = inlined_call_operand.vmem [shape: s32[1,16], index: 2, kind: input, shape index: {}]   ;;  %s3691_s3 = inlined_call_operand.hbm [shape: f32[8,32], index: 3, kind: input, shape index: {}]   ;;  %s3692_s4 = inlined_call_operand.vmem [shape: f32[16,32], index: 4, kind: input, shape index: {}]   ;;  %s3693_s5 = inlined_call_operand.hbm [shape: bf16[15,32,32], index: 5, kind: input, shape index: {}]   ;;  %s3694_s6 = inlined_call_operand.hbm [shape: bf16[15,32,32], index: 6, kind: input, shape index: {}]   ;;  %s3695_s7 = inlined_call_operand.hbm [shape: bf16[15,32,32], index: 7, kind: input, shape index: {}]   ;;  %s3696_s8 = inlined_call_operand.vmem [shape: f32[15,1,32], index: 8, kind: input, shape index: {}]   ;;  %s3697_s9 = inlined_call_operand.hbm [shape: bf16[15,32,32], index: 9, kind: input, shape index: {}]   ;;  %s3698_s10 = inlined_call_operand.vmem [shape: f32[15,1,32], index: 10, kind: input, shape index: {}]   ;;  %s3699_s11 = inlined_call_operand.vmem [shape: f32[15,1,32], index: 11, kind: input, shape index: {}]   ;;  %s3700_s12 = inlined_call_operand.vmem [shape: f32[15,1,32], index: 12, kind: input, shape index: {}]   ;;  %s3701_s13 = inlined_call_operand.hbm [shape: bf16[15,32,32], index: 13, kind: input, shape index: {}]   ;;  %s3702_s14 = inlined_call_operand.hbm [shape: bf16[15,32,32], index: 14, kind: input, shape index: {}]   ;;  %s3703_s15 = inlined_call_operand.hbm [shape: f32[15,1,32], index: 15, kind: input, shape index: {}]   ;;  %s3704_s16 = inlined_call_operand.hbm [shape: bf16[15,32,32], index: 16, kind: input, shape index: {}]   ;;  %s3705_s17 = inlined_call_operand.vmem [shape: f32[15,1,32], index: 17, kind: input, shape index: {}]   ;;  %s3706_s18 = inlined_call_operand.hbm [shape: f32[15,1,32], index: 18, kind: input, shape index: {}]   ;;  %s3707_s19 = inlined_call_operand.hbm [shape: f32[15,1,32], index: 19, kind: input, shape index: {}]   ;;  %s3708_s20 = inlined_call_operand.hbm [shape: f32[8,32], index: 20, kind: output, shape index: {0}]   ;;  %s3709_s21 = inlined_call_operand.hbm [shape: f32[16,32], index: 21, kind: output, shape index: {1}]  }
   0x1   :  { %3739 = sst [smem:[#allocation36_spill]] %s3688_s0 }
   0x2   :  { %3740 = sst [smem:[#allocation37_spill]] %s3689_s1 }
   0x3   :  { %3741 = sst [smem:[#allocation38_spill]] %s3690_s2 }
   0x4   :  { %3742 = sst [smem:[#allocation39_spill]] %s3691_s3 }
   0x5   :  { %3743 = sst [smem:[#allocation40_spill]] %s3692_s4 }
   0x6   :  { %3744 = sst [smem:[#allocation41_spill]] %s3693_s5 }
   0x7   :  { %3745 = sst [smem:[#allocation42_spill]] %s3694_s6 }
   0x8   :  { %3746 = sst [smem:[#allocation43_spill]] %s3695_s7 }
   0x9   :  { %3747 = sst [smem:[#allocation44_spill]] %s3698_s10 }
   0xa   :  { %3748 = sst [smem:[#allocation45_spill]] %s3699_s11 }
   0xb   :  { %3749 = sst [smem:[#allocation46_spill]] %s3700_s12 }
   0xc   :  { %3750 = sst [smem:[#allocation47_spill]] %s3701_s13 }
   0xd   :  { %3751 = sst [smem:[#allocation48_spill]] %s3703_s15 }
   0xe   :  { %3752 = sst [smem:[#allocation49_spill]] %s3705_s17 }
   0xf   :  { %3753 = sst [smem:[#allocation50_spill]] %s3706_s18 }
  0x10   :  { %3754 = sst [smem:[#allocation51_spill]] %s3708_s20 }
  0x11   :  { %3755 = sst [smem:[#allocation52_spill]] %s3709_s21 }
  0x12   :  { %27 = vsyncpa [#allocation5], 0 }
  0x13   :  { %28 = vsyncpa [#allocation8], 0 }
  0x14   :  { %30 = vsyncpa [#allocation8 + $0x1], 0 }
  0x15   :  { %31 = vsyncpa [#allocation11], 0 }
  0x16   :  { %33 = vsyncpa [#allocation11 + $0x1], 0 }
  0x17   :  { %34 = vsyncpa [#allocation14], 0 }
  0x18   :  { %36 = vsyncpa [#allocation14 + $0x1], 0 }
  0x19   :  { %37 = vsyncpa [#allocation17], 0 }
  0x1a   :  { %39 = vsyncpa [#allocation17 + $0x1], 0 }
  0x1b   :  { %40 = vsyncpa [#allocation20], 0 }
  0x1c   :  { %42 = vsyncpa [#allocation20 + $0x1], 0 }
  0x1d   :  { %43 = vsyncpa [#allocation6], 0 }
  0x1e   :  { %44 = vsyncpa [#allocation24], 0  ;;  %s2975_s2 = smov 0   ;;  %s2977_s25 = smov 0  }
  0x1f   :  { %s2979_s26 = smov 0   ;;  %s2981_s27 = smov 0  }
  0x20 LB: > { %3756 = sst [smem:[#allocation33_spill]] %s2838_s26  ;;  %s2996_s3 = sadd.s32 1, %s2842_s27   ;;  %s2842_s27 = sphi %s2981_s27, %s3819_s27   ;;  %s2838_s26 = sphi %s2979_s26, %s3821_s26   ;;  %s2834_s25 = sphi %s2977_s25, %s3823_s25   ;;  %s2830_s2 = sphi %s2975_s2, %s3822_s2  }
  0x21   : > { %3757 = sst [smem:[#allocation34_spill]] %s2996_s3  ;;  %s162_s28 = sadd.s32 1, %s2838_s26 }
  0x22   : > { %s159_s29 = ssub.s32 %s2842_s27, %s2996_s3  ;;  %p169_p0 = scmp.ne.s32.totalorder %s2838_s26, %s2834_s25 }
  0x23   : > { %p160_p1 = scmp.eq.s32.totalorder %s159_s29, 0  ;;  %p170_p2 = scmp.eq.s32.totalorder %s2842_s27, 0 }
  0x24   : > { %p2329_p3 = scmp.lt.s32.totalorder %s2842_s27, 15  ;;  %s3009_s4 = sand.u32 1, %s2842_s27  }
  0x25   : > { %s3006_s0 = scalar_select %p160_p1, %s2838_s26, %s162_s28  }
  0x26   : > { %p171_p4 = por %p170_p2, %p169_p0  ;;  %s3012_s30 = sand.u32 1, %s2838_s26  }
  0x27   : > { %3758 = sst [smem:[#allocation35_spill]] %s3006_s0  ;;  %s3015_s5 = sshll.u32 %s3012_s30, 4 }
  0x28   : > { %s3018_s22 = sshll.u32 %s2842_s27, 8  ;;  %s3759_s24 = sld [smem:[#allocation41_spill]] }
  0x29   : > { %s632_s28 = scalar_lea.vmem [#allocation7], %s3015_s5  ;;  %p3027_p5 = pnand %p2329_p3, %p171_p4 }
  0x2a   : > { %s639_s0 = sshll.u32 %s632_s28, 4  ;;  %s3031_s0 = int_to_ptr.vmem [resolvable:$true] %s639_s0 }
  0x2b   : > { %s3760_s26 = scalar_select %p3027_p5, 1, 0 }
  0x2c   : > { %p3038_p7 = pneg %p3027_p5 }
  0x2e   : > { %s3024_s29 = scalar_lea.hbm %s3759_s24, %s3018_s22  ;;  %s2405_s21 = scalar_lea.hbm %s3759_s24, 3840 }
  0x2f   : > { %s2400_s20 = scalar_lea.hbm %s3024_s29, 256  ;;  %p2406_p10 = scmp.lt.u32.totalorder %s3024_s29, %s3759_s24 }
  0x30   : > { %p2401_p6 = scmp.ne.s32.totalorder %s3024_s29, %s2400_s20  ;;  %p2407_p11 = scmp.lt.u32.totalorder %s2405_s21, %s2400_s20 }
  0x31   : > { %s3761_s23 = scalar_select %p3038_p7, 1, 0 }
  0x32   : > { %p2403_p8 = pnand %p3038_p7, %p2401_p6  ;;  %p2408_p12 = por %p2407_p11, %p2406_p10 }
  0x33   : > { %p2409_p13 = scmp.lt.u32.totalorder %s2400_s20, %s3024_s29 }
  0x34   : > { %p2404_p9 = pneg %p2403_p8 }
  0x35   : > { %p2410_p0 = por %p2409_p13, %p2408_p12 }
  0x37   : > { %p2411_p1 = pnand %p2410_p0, %p2404_p9 }
  0x39   : > { %2414 = shalt.err (!%p2411_p1)
}
  0x3a   : > { %s2415_s3 = scalar_lea.vmem %s3031_s0, 256  ;;  %s2844_s1 = smov [#allocation7]  }
  0x3b   : > { %p2416_p2 = scmp.ne.s32.totalorder %s3031_s0, %s2415_s3  ;;  %s2420_s28 = sshll.u32 %s2844_s1, 4  ;;  %s2421_s28 = int_to_ptr.vmem [resolvable:$false] %s2420_s28 }
  0x3c   : > { %s2422_s12 = scalar_lea.vmem %s2421_s28, 512  ;;  %p2423_p6 = scmp.lt.s32.totalorder %s3031_s0, %s2421_s28 }
  0x3d   : > { %p2418_p3 = pnand %p2416_p2, %p3038_p7  ;;  %p2424_p8 = scmp.lt.s32.totalorder %s2422_s12, %s2415_s3 }
  0x3f   : > { %p2419_p4 = pneg %p2418_p3  ;;  %p2425_p10 = por %p2424_p8, %p2423_p6 }
  0x41   : > { %p2426_p11 = pnand %p2425_p10, %p2419_p4 }
  0x43   : > { %2429 = shalt.err (!%p2426_p11)
}
  0x44   : > { %s3723_s17 = smov 64   ;;  %s3725_s20 = smov 4  }
  0x45   : > { %s3762_s21 = scalar_lea.sflag [#allocation8], %s3009_s4  ;;  %s3763_s7 = sld [smem:[#allocation43_spill]] }
  0x46   : > { %2300 = dma.hbm_to_vmem [thread:$0]  (!%p3027_p5), %s3024_s29, 256, %s3031_s0, %s3762_s21, %s3723_s17, %s3723_s17, %s3725_s20  }
  0x47   : > { %s674_s12 = scalar_lea.vmem [#allocation10], %s3015_s5  ;;  %s3721_s11 = scalar_lea.sflag [#allocation11], %s3009_s4 }
  0x48   : > { %s681_s24 = sshll.u32 %s674_s12, 4  ;;  %s3073_s24 = int_to_ptr.vmem [resolvable:$true] %s681_s24 }
  0x4b   : > { %s3070_s28 = scalar_lea.hbm %s3763_s7, %s3018_s22  ;;  %s2435_s21 = scalar_lea.hbm %s3763_s7, 3840 }
  0x4c   : > { %s2430_s10 = scalar_lea.hbm %s3070_s28, 256  ;;  %p2436_p0 = scmp.lt.u32.totalorder %s3070_s28, %s3763_s7 }
  0x4d   : > { %p2431_p9 = scmp.ne.s32.totalorder %s3070_s28, %s2430_s10  ;;  %p2437_p1 = scmp.lt.u32.totalorder %s2435_s21, %s2430_s10 }
  0x4e   : > { %p2439_p3 = scmp.lt.u32.totalorder %s2430_s10, %s3070_s28 }
  0x4f   : > { %p2433_p12 = pnand %p2431_p9, %p3038_p7  ;;  %p2438_p2 = por %p2437_p1, %p2436_p0 }
  0x51   : > { %p2434_p13 = pneg %p2433_p12  ;;  %p2440_p4 = por %p2439_p3, %p2438_p2 }
  0x53   : > { %p2441_p6 = pnand %p2440_p4, %p2434_p13 }
  0x55   : > { %2444 = shalt.err (!%p2441_p6)
}
  0x56   : > { %s2445_s12 = scalar_lea.vmem %s3073_s24, 256  ;;  %s2847_s0 = smov [#allocation10]  }
  0x57   : > { %p2446_p8 = scmp.ne.s32.totalorder %s3073_s24, %s2445_s12  ;;  %s2450_s29 = sshll.u32 %s2847_s0, 4  ;;  %s2451_s29 = int_to_ptr.vmem [resolvable:$false] %s2450_s29 }
  0x58   : > { %s2452_s3 = scalar_lea.vmem %s2451_s29, 512  ;;  %p2453_p9 = scmp.lt.s32.totalorder %s3073_s24, %s2451_s29 }
  0x59   : > { %p2448_p10 = pnand %p2446_p8, %p3038_p7  ;;  %p2454_p12 = scmp.lt.s32.totalorder %s2452_s3, %s2445_s12 }
  0x5b   : > { %p2449_p11 = pneg %p2448_p10  ;;  %p2455_p0 = por %p2454_p12, %p2453_p9 }
  0x5d   : > { %p2456_p1 = pnand %p2455_p0, %p2449_p11 }
  0x5f   : > { %2459 = shalt.err (!%p2456_p1)
}
  0x60   : > { %2306 = dma.hbm_to_vmem [thread:$0]  (!%p3027_p5), %s3070_s28, 256, %s3073_s24, %s3721_s11, %s3723_s17, %s3723_s17, %s3725_s20  }
  0x61   : > { %s3764_s13 = sld [smem:[#allocation47_spill]]  ;;  %s740_s12 = scalar_lea.vmem [#allocation13], %s3015_s5 }
  0x62   : > { %s747_s0 = sshll.u32 %s740_s12, 4  ;;  %s3722_s29 = scalar_lea.sflag [#allocation14], %s3009_s4  ;;  %s3109_s0 = int_to_ptr.vmem [resolvable:$true] %s747_s0 }
  0x67   : > { %s3106_s1 = scalar_lea.hbm %s3764_s13, %s3018_s22  ;;  %s2465_s10 = scalar_lea.hbm %s3764_s13, 3840 }
  0x68   : > { %s2460_s3 = scalar_lea.hbm %s3106_s1, 256  ;;  %p2466_p4 = scmp.lt.u32.totalorder %s3106_s1, %s3764_s13 }
  0x69   : > { %p2461_p13 = scmp.ne.s32.totalorder %s3106_s1, %s2460_s3  ;;  %p2467_p6 = scmp.lt.u32.totalorder %s2465_s10, %s2460_s3 }
  0x6a   : > { %p2469_p10 = scmp.lt.u32.totalorder %s2460_s3, %s3106_s1 }
  0x6b   : > { %p2463_p2 = pnand %p2461_p13, %p3038_p7  ;;  %p2468_p8 = por %p2467_p6, %p2466_p4 }
  0x6d   : > { %p2464_p3 = pneg %p2463_p2  ;;  %p2470_p11 = por %p2469_p10, %p2468_p8 }
  0x6f   : > { %p2471_p9 = pnand %p2470_p11, %p2464_p3 }
  0x71   : > { %2474 = shalt.err (!%p2471_p9)
}
  0x72   : > { %s2475_s12 = scalar_lea.vmem %s3109_s0, 256  ;;  %s2848_s24 = smov [#allocation13]  }
  0x73   : > { %p2476_p12 = scmp.ne.s32.totalorder %s3109_s0, %s2475_s12  ;;  %s2480_s28 = sshll.u32 %s2848_s24, 4  ;;  %s2481_s28 = int_to_ptr.vmem [resolvable:$false] %s2480_s28 }
  0x74   : > { %s2482_s11 = scalar_lea.vmem %s2481_s28, 512  ;;  %p2483_p13 = scmp.lt.s32.totalorder %s3109_s0, %s2481_s28 }
  0x75   : > { %p2478_p0 = pnand %p2476_p12, %p3038_p7  ;;  %p2484_p2 = scmp.lt.s32.totalorder %s2482_s11, %s2475_s12 }
  0x77   : > { %p2479_p1 = pneg %p2478_p0  ;;  %p2485_p4 = por %p2484_p2, %p2483_p13 }
  0x79   : > { %p2486_p6 = pnand %p2485_p4, %p2479_p1 }
  0x7b   : > { %2489 = shalt.err (!%p2486_p6)
}
  0x7c   : > { %2312 = dma.hbm_to_vmem [thread:$0]  (!%p3027_p5), %s3106_s1, 256, %s3109_s0, %s3722_s29, %s3723_s17, %s3723_s17, %s3725_s20  }
  0x7d   : > { %s3139_s3 = sshll.u32 %s2842_s27, 4  ;;  %s781_s10 = scalar_lea.vmem [#allocation16], %s3012_s30 }
  0x7e   : > { %s788_s21 = sshll.u32 %s781_s10, 4  ;;  %s3765_s15 = sld [smem:[#allocation48_spill]]  ;;  %s789_s21 = int_to_ptr.vmem [resolvable:$true] %s788_s21 }
  0x7f   : > { %s3729_s11 = scalar_lea.sflag [#allocation17], %s3009_s4 }
  0x84   : > { %s3146_s28 = scalar_lea.hbm %s3765_s15, %s3139_s3  ;;  %s2495_s10 = scalar_lea.hbm %s3765_s15, 240 }
  0x85   : > { %s2490_s7 = scalar_lea.hbm %s3146_s28, 16  ;;  %p2496_p11 = scmp.lt.u32.totalorder %s3146_s28, %s3765_s15 }
  0x86   : > { %p2491_p3 = scmp.ne.s32.totalorder %s3146_s28, %s2490_s7  ;;  %p2497_p9 = scmp.lt.u32.totalorder %s2495_s10, %s2490_s7 }
  0x87   : > { %p2499_p0 = scmp.lt.u32.totalorder %s2490_s7, %s3146_s28 }
  0x88   : > { %p2493_p8 = pnand %p2491_p3, %p3038_p7  ;;  %p2498_p12 = por %p2497_p9, %p2496_p11 }
  0x8a   : > { %p2494_p10 = pneg %p2493_p8  ;;  %p2500_p1 = por %p2499_p0, %p2498_p12 }
  0x8c   : > { %p2501_p13 = pnand %p2500_p1, %p2494_p10 }
  0x8e   : > { %2504 = shalt.err (!%p2501_p13)
}
  0x8f   : > { %s2505_s12 = scalar_lea.vmem %s789_s21, 16  ;;  %s2849_s24 = smov [#allocation16]  }
  0x90   : > { %p2506_p2 = scmp.ne.s32.totalorder %s789_s21, %s2505_s12  ;;  %s2510_s20 = sshll.u32 %s2849_s24, 4  ;;  %s2511_s20 = int_to_ptr.vmem [resolvable:$false] %s2510_s20 }
  0x91   : > { %s2512_s1 = scalar_lea.vmem %s2511_s20, 32  ;;  %p2513_p3 = scmp.lt.s32.totalorder %s789_s21, %s2511_s20 }
  0x92   : > { %p2508_p4 = pnand %p2506_p2, %p3038_p7  ;;  %p2514_p8 = scmp.lt.s32.totalorder %s2512_s1, %s2505_s12 }
  0x94   : > { %p2509_p6 = pneg %p2508_p4  ;;  %p2515_p5 = por %p2514_p8, %p2513_p3 }
  0x96   : > { %p2516_p9 = pnand %p2515_p5, %p2509_p6 }
  0x98   : > { %2519 = shalt.err (!%p2516_p9)
}
  0x99   : > { %p3766_p11 = scmp.ne.s32.totalorder %s3760_s26, 0  ;;  %s3767_s18 = sld [smem:[#allocation50_spill]] }
  0x9a   : > { %s825_s20 = scalar_lea.vmem [#allocation19], %s3012_s30  ;;  %s3730_s10 = scalar_lea.sflag [#allocation20], %s3009_s4 }
  0x9b   : > { %2318 = dma.hbm_to_vmem [thread:$0]  (!%p3766_p11), %s3146_s28, 16, %s789_s21, %s3729_s11  }
  0x9c   : > { %s832_s0 = sshll.u32 %s825_s20, 4  ;;  %s833_s0 = int_to_ptr.vmem [resolvable:$true] %s832_s0 }
  0x9f   : > { %s3172_s29 = scalar_lea.hbm %s3767_s18, %s3139_s3  ;;  %s2525_s28 = scalar_lea.hbm %s3767_s18, 240 }
  0xa0   : > { %s2520_s12 = scalar_lea.hbm %s3172_s29, 16  ;;  %p2526_p0 = scmp.lt.u32.totalorder %s3172_s29, %s3767_s18 }
  0xa1   : > { %p2521_p5 = scmp.ne.s32.totalorder %s3172_s29, %s2520_s12  ;;  %p2527_p1 = scmp.lt.u32.totalorder %s2525_s28, %s2520_s12 }
  0xa2   : > { %p2529_p2 = scmp.lt.u32.totalorder %s2520_s12, %s3172_s29 }
  0xa3   : > { %p2523_p10 = pnand %p2521_p5, %p3038_p7  ;;  %p2528_p13 = por %p2527_p1, %p2526_p0 }
  0xa5   : > { %p2524_p12 = pneg %p2523_p10  ;;  %p2530_p4 = por %p2529_p2, %p2528_p13 }
  0xa7   : > { %p2531_p6 = pnand %p2530_p4, %p2524_p12 }
  0xa9   : > { %2534 = shalt.err (!%p2531_p6)
}
  0xaa   : > { %s2535_s17 = scalar_lea.vmem %s833_s0, 16  ;;  %s2850_s20 = smov [#allocation19]  }
  0xab   : > { %p2536_p3 = scmp.ne.s32.totalorder %s833_s0, %s2535_s17  ;;  %s2540_s11 = sshll.u32 %s2850_s20, 4  ;;  %s2541_s11 = int_to_ptr.vmem [resolvable:$false] %s2540_s11 }
  0xac   : > { %s2542_s24 = scalar_lea.vmem %s2541_s11, 32  ;;  %p2543_p5 = scmp.lt.s32.totalorder %s833_s0, %s2541_s11 }
  0xad   : > { %p2538_p8 = pnand %p2536_p3, %p3038_p7  ;;  %p2544_p10 = scmp.lt.s32.totalorder %s2542_s24, %s2535_s17 }
  0xaf   : > { %p2539_p9 = pneg %p2538_p8  ;;  %p2545_p11 = por %p2544_p10, %p2543_p5 }
  0xb1   : > { %p2546_p0 = pnand %p2545_p11, %p2539_p9 }
  0xb3   : > { %2549 = shalt.err (!%p2546_p0)
}
  0xb4   : > { %p3768_p1 = scmp.ne.s32.totalorder %s3760_s26, 0  ;;  %s3196_s12 = sadd.s32 4294967295, %s2842_s27  }
  0xb5   : > { %p175_p11 = scmp.ne.s32.totalorder %s2834_s25, %s2830_s2  ;;  %p3731_p12 = scmp.eq.s32.totalorder %s3196_s12, 0 }
  0xb6   : > { %2324 = dma.hbm_to_vmem [thread:$0]  (!%p3768_p1), %s3172_s29, 16, %s833_s0, %s3730_s10  }
  0xb7   : > { %p2080_p13 = scmp.ge.s32.totalorder %s2842_s27, 1  ;;  %p592_p2 = scmp.lt.s32.totalorder %s2842_s27, 16 }
  0xb8   : > { %p3205_p4 = por %p3731_p12, %p175_p11  ;;  %s2851_s29 = smov [#allocation4]  }
  0xb9   : > { %p3210_p3 = pnand %p2080_p13, %p592_p2  ;;  %s614_s0 = sshll.u32 %s2851_s29, 4  ;;  %s3216_s0 = int_to_ptr.vmem [resolvable:$true] %s614_s0 }
  0xba   : > { %s3769_s11 = scalar_select %p3205_p4, 1, 0 }
  0xbb   : > { %s3770_s21 = scalar_select %p3210_p3, 1, 0 }
  0xbc   : > { %p2293_p8 = pneg %p3210_p3  ;;  %s3771_s6 = sld [smem:[#allocation42_spill]] }
  0xbd   : > { %s653_s1 = scalar_lea.vmem [#allocation9], %s3015_s5 }
  0xbe   : > { %s660_s7 = sshll.u32 %s653_s1, 4  ;;  %p3227_p9 = pnand %p2293_p8, %p3731_p12  ;;  %s3231_s7 = int_to_ptr.vmem [resolvable:$true] %s660_s7 }
  0xc0   : > { %s3772_s17 = scalar_select %p3227_p9, 1, 0 }
  0xc2   : > { %s3222_s27 = scalar_lea.hbm %s3771_s6, %s3018_s22  ;;  %s2555_s2 = scalar_lea.hbm %s3771_s6, 3840 }
  0xc3   : > { %s2550_s20 = scalar_lea.hbm %s3222_s27, 256  ;;  %p2556_p11 = scmp.lt.u32.totalorder %s3222_s27, %s3771_s6 }
  0xc4   : > { %p2551_p5 = scmp.ne.s32.totalorder %s3222_s27, %s2550_s20  ;;  %p2557_p13 = scmp.lt.u32.totalorder %s2555_s2, %s2550_s20 }
  0xc5   : > { %p2559_p8 = scmp.lt.u32.totalorder %s2550_s20, %s3222_s27 }
  0xc6   : > { %p2553_p10 = pnand %p2551_p5, %p3038_p7  ;;  %p2558_p2 = por %p2557_p13, %p2556_p11 }
  0xc8   : > { %p2554_p0 = pneg %p2553_p10  ;;  %p2560_p6 = por %p2559_p8, %p2558_p2 }
  0xca   : > { %p2561_p12 = pnand %p2560_p6, %p2554_p0 }
  0xcc   : > { %2564 = shalt.err (!%p2561_p12)
}
  0xcd   : > { %s2565_s1 = scalar_lea.vmem %s3231_s7, 256  ;;  %s2852_s24 = smov [#allocation9]  }
  0xce   : > { %p2566_p5 = scmp.ne.s32.totalorder %s3231_s7, %s2565_s1  ;;  %s2570_s29 = sshll.u32 %s2852_s24, 4  ;;  %s2571_s29 = int_to_ptr.vmem [resolvable:$false] %s2570_s29 }
  0xcf   : > { %s2572_s10 = scalar_lea.vmem %s2571_s29, 512  ;;  %p2573_p3 = scmp.lt.s32.totalorder %s3231_s7, %s2571_s29 }
  0xd0   : > { %p2568_p10 = pnand %p2566_p5, %p3038_p7  ;;  %p2574_p9 = scmp.lt.s32.totalorder %s2572_s10, %s2565_s1 }
  0xd2   : > { %p2569_p4 = pneg %p2568_p10  ;;  %p2575_p11 = por %p2574_p9, %p2573_p3 }
  0xd4   : > { %p2576_p13 = pnand %p2575_p11, %p2569_p4 }
  0xd6   : > { %2579 = shalt.err (!%p2576_p13)
}
  0xd7   : > { %s3773_s20 = smov 4   ;;  %s3774_s2 = smov 64  }
  0xd8   : > { %s3775_s28 = scalar_lea.sflag [#allocation8], %s3009_s4  ;;  %s3776_s13 = sld [smem:[#allocation39_spill]] }
  0xd9   : > { %2303 = dma.hbm_to_vmem [thread:$0]  (!%p3768_p1), %s3222_s27, 256, %s3231_s7, %s3775_s28, %s3774_s2, %s3774_s2, %s3773_s20  }
  0xda   : > { %p3777_p4 = scmp.ne.s32.totalorder %s3772_s17, 0 }
  0xdc   : > { %p2582_p6 = pneg %p3777_p4 }
  0xde   : > { %s2580_s15 = scalar_lea.hbm %s3776_s13, 128 }
  0xdf   : > { %p2581_p12 = scmp.ne.s32.totalorder %s3776_s13, %s2580_s15  ;;  %p2587_p0 = scmp.lt.u32.totalorder %s2580_s15, %s3776_s13 }
  0xe1   : > { %p2583_p3 = pnand %p2582_p6, %p2581_p12 }
  0xe3   : > { %p2584_p9 = pneg %p2583_p3 }
  0xe5   : > { %p2589_p2 = pnand %p2587_p0, %p2584_p9 }
  0xe7   : > { %2592 = shalt.err (!%p2589_p2)
}
  0xe8   : > { %s2593_s27 = scalar_lea.vmem %s3216_s0, 128  ;;  %p2601_p11 = scmp.lt.s32.totalorder %s3216_s0, %s3216_s0 }
  0xe9   : > { %p2594_p8 = scmp.ne.s32.totalorder %s3216_s0, %s2593_s27  ;;  %p2602_p13 = scmp.lt.s32.totalorder %s2593_s27, %s2593_s27 }
  0xeb   : > { %p2596_p5 = pnand %p2594_p8, %p2582_p6  ;;  %p2603_p1 = por %p2602_p13, %p2601_p11 }
  0xed   : > { %p2597_p10 = pneg %p2596_p5 }
  0xef   : > { %p2604_p7 = pnand %p2603_p1, %p2597_p10 }
  0xf1   : > { %2607 = shalt.err (!%p2604_p7)
}
  0xf2   : > { %2296 = dma.hbm_to_vmem [thread:$0]  (!%p3777_p4), %s3776_s13, 128, %s3216_s0, [#allocation5]  }
  0xf3   : > { %s3284_s28 = scalar_lea.hbm %s3697_s9, %s3018_s22  ;;  %s701_s24 = scalar_lea.vmem [#allocation12], %s3015_s5 }
  0xf4   : > { %s708_s29 = sshll.u32 %s701_s24, 4  ;;  %s2608_s17 = scalar_lea.hbm %s3284_s28, 256  ;;  %s3287_s29 = int_to_ptr.vmem [resolvable:$true] %s708_s29 }
  0xf5   : > { %p2609_p7 = scmp.ne.s32.totalorder %s3284_s28, %s2608_s17  ;;  %p3778_p1 = scmp.ne.s32.totalorder %s3761_s23, 0 }
  0xf6   : > { %s2613_s10 = scalar_lea.hbm %s3697_s9, 3840  ;;  %p2614_p4 = scmp.lt.u32.totalorder %s3284_s28, %s3697_s9 }
  0xf7   : > { %p2611_p12 = pnand %p2609_p7, %p3778_p1  ;;  %p2615_p3 = scmp.lt.u32.totalorder %s2613_s10, %s2608_s17 }
  0xf8   : > { %p2617_p0 = scmp.lt.u32.totalorder %s2608_s17, %s3284_s28 }
  0xf9   : > { %p2612_p6 = pneg %p2611_p12  ;;  %p2616_p9 = por %p2615_p3, %p2614_p4 }
  0xfb   : > { %p2618_p2 = por %p2617_p0, %p2616_p9 }
  0xfd   : > { %p2619_p8 = pnand %p2618_p2, %p2612_p6 }
  0xff   : > { %2622 = shalt.err (!%p2619_p8)
}
 0x100   : > { %s2623_s15 = scalar_lea.vmem %s3287_s29, 256  ;;  %s2853_s18 = smov [#allocation12]  }
 0x101   : > { %p2624_p5 = scmp.ne.s32.totalorder %s3287_s29, %s2623_s15  ;;  %s2628_s7 = sshll.u32 %s2853_s18, 4  ;;  %s2629_s7 = int_to_ptr.vmem [resolvable:$false] %s2628_s7 }
 0x102   : > { %s2630_s24 = scalar_lea.vmem %s2629_s7, 512  ;;  %p2631_p13 = scmp.lt.s32.totalorder %s3287_s29, %s2629_s7 }
 0x103   : > { %p2626_p10 = pnand %p2624_p5, %p3778_p1  ;;  %p2632_p7 = scmp.lt.s32.totalorder %s2630_s24, %s2623_s15 }
 0x105   : > { %p2627_p11 = pneg %p2626_p10  ;;  %p2633_p12 = por %p2632_p7, %p2631_p13 }
 0x107   : > { %p2634_p4 = pnand %p2633_p12, %p2627_p11 }
 0x109   : > { %2637 = shalt.err (!%p2634_p4)
}
 0x10a   : > { %p3779_p6 = scmp.ne.s32.totalorder %s3760_s26, 0  ;;  %s3780_s17 = scalar_lea.sflag [#allocation11], %s3009_s4 }
 0x10b   : > { %s3319_s10 = scalar_lea.hbm %s3702_s14, %s3018_s22  ;;  %s761_s27 = scalar_lea.vmem [#allocation15], %s3015_s5 }
 0x10c   : > { %2309 = dma.hbm_to_vmem [thread:$0]  (!%p3779_p6), %s3284_s28, 256, %s3287_s29, %s3780_s17, %s3774_s2, %s3774_s2, %s3773_s20  }
 0x10d   : > { %s768_s6 = sshll.u32 %s761_s27, 4  ;;  %s2638_s15 = scalar_lea.hbm %s3319_s10, 256  ;;  %s3322_s6 = int_to_ptr.vmem [resolvable:$true] %s768_s6 }
 0x10e   : > { %p2639_p3 = scmp.ne.s32.totalorder %s3319_s10, %s2638_s15  ;;  %s2643_s29 = scalar_lea.hbm %s3702_s14, 3840 }
 0x10f   : > { %p2644_p2 = scmp.lt.u32.totalorder %s3319_s10, %s3702_s14  ;;  %p2645_p8 = scmp.lt.u32.totalorder %s2643_s29, %s2638_s15 }
 0x110   : > { %p2641_p9 = pnand %p2639_p3, %p3778_p1  ;;  %p2647_p10 = scmp.lt.u32.totalorder %s2638_s15, %s3319_s10 }
 0x111   : > { %p2646_p5 = por %p2645_p8, %p2644_p2 }
 0x112   : > { %p2642_p0 = pneg %p2641_p9 }
 0x113   : > { %p2648_p11 = por %p2647_p10, %p2646_p5 }
 0x115   : > { %p2649_p13 = pnand %p2648_p11, %p2642_p0 }
 0x117   : > { %2652 = shalt.err (!%p2649_p13)
}
 0x118   : > { %s2653_s17 = scalar_lea.vmem %s3322_s6, 256  ;;  %s2854_s1 = smov [#allocation15]  }
 0x119   : > { %p2654_p7 = scmp.ne.s32.totalorder %s3322_s6, %s2653_s17  ;;  %s2658_s0 = sshll.u32 %s2854_s1, 4  ;;  %s2659_s0 = int_to_ptr.vmem [resolvable:$false] %s2658_s0 }
 0x11a   : > { %s2660_s27 = scalar_lea.vmem %s2659_s0, 512  ;;  %p2661_p3 = scmp.lt.s32.totalorder %s3322_s6, %s2659_s0 }
 0x11b   : > { %p2656_p12 = pnand %p2654_p7, %p3778_p1  ;;  %p2662_p9 = scmp.lt.s32.totalorder %s2660_s27, %s2653_s17 }
 0x11d   : > { %p2657_p4 = pneg %p2656_p12  ;;  %p2663_p2 = por %p2662_p9, %p2661_p3 }
 0x11f   : > { %p2664_p8 = pnand %p2663_p2, %p2657_p4 }
 0x121   : > { %2667 = shalt.err (!%p2664_p8)
}
 0x122   : > { %s3781_s15 = scalar_lea.sflag [#allocation14], %s3009_s4  ;;  %s3354_s29 = scalar_lea.hbm %s3704_s16, %s3018_s22 }
 0x123   : > { %2315 = dma.hbm_to_vmem [thread:$0]  (!%p3779_p6), %s3319_s10, 256, %s3322_s6, %s3781_s15, %s3774_s2, %s3774_s2, %s3773_s20  }
 0x124   : > { %s799_s7 = scalar_lea.vmem [#allocation18], %s3015_s5  ;;  %s2668_s17 = scalar_lea.hbm %s3354_s29, 256 }
 0x125   : > { %s806_s24 = sshll.u32 %s799_s7, 4  ;;  %p2669_p0 = scmp.ne.s32.totalorder %s3354_s29, %s2668_s17  ;;  %s3357_s24 = int_to_ptr.vmem [resolvable:$true] %s806_s24 }
 0x126   : > { %s2673_s6 = scalar_lea.hbm %s3704_s16, 3840  ;;  %p2674_p11 = scmp.lt.u32.totalorder %s3354_s29, %s3704_s16 }
 0x127   : > { %p2671_p5 = pnand %p2669_p0, %p3778_p1  ;;  %p2675_p13 = scmp.lt.u32.totalorder %s2673_s6, %s2668_s17 }
 0x128   : > { %p2677_p12 = scmp.lt.u32.totalorder %s2668_s17, %s3354_s29 }
 0x129   : > { %p2672_p10 = pneg %p2671_p5  ;;  %p2676_p7 = por %p2675_p13, %p2674_p11 }
 0x12b   : > { %p2678_p4 = por %p2677_p12, %p2676_p7 }
 0x12d   : > { %p2679_p3 = pnand %p2678_p4, %p2672_p10 }
 0x12f   : > { %2682 = shalt.err (!%p2679_p3)
}
 0x130   : > { %s2683_s5 = scalar_lea.vmem %s3357_s24, 256  ;;  %s2855_s27 = smov [#allocation18]  }
 0x131   : > { %p2684_p9 = scmp.ne.s32.totalorder %s3357_s24, %s2683_s5  ;;  %s2688_s15 = sshll.u32 %s2855_s27, 4  ;;  %s2689_s15 = int_to_ptr.vmem [resolvable:$false] %s2688_s15 }
 0x132   : > { %s2690_s18 = scalar_lea.vmem %s2689_s15, 512  ;;  %p2691_p0 = scmp.lt.s32.totalorder %s3357_s24, %s2689_s15 }
 0x133   : > { %p2686_p2 = pnand %p2684_p9, %p3778_p1  ;;  %p2692_p5 = scmp.lt.s32.totalorder %s2690_s18, %s2683_s5 }
 0x135   : > { %p2687_p8 = pneg %p2686_p2  ;;  %p2693_p11 = por %p2692_p5, %p2691_p0 }
 0x137   : > { %p2694_p13 = pnand %p2693_p11, %p2687_p8 }
 0x139   : > { %2697 = shalt.err (!%p2694_p13)
}
 0x13a   : > { %s3782_s28 = scalar_lea.sflag [#allocation17], %s3009_s4  ;;  %s3389_s1 = scalar_lea.hbm %s3707_s19, %s3139_s3 }
 0x13b   : > { %2321 = dma.hbm_to_vmem [thread:$0]  (!%p3779_p6), %s3354_s29, 256, %s3357_s24, %s3782_s28, %s3774_s2, %s3774_s2, %s3773_s20  }
 0x13c   : > { %s842_s10 = scalar_lea.vmem [#allocation21], %s3012_s30  ;;  %s2698_s0 = scalar_lea.hbm %s3389_s1, 16 }
 0x13d   : > { %s849_s6 = sshll.u32 %s842_s10, 4  ;;  %p2699_p10 = scmp.ne.s32.totalorder %s3389_s1, %s2698_s0  ;;  %s850_s6 = int_to_ptr.vmem [resolvable:$true] %s849_s6 }
 0x13e   : > { %s2703_s20 = scalar_lea.hbm %s3707_s19, 240  ;;  %p2704_p4 = scmp.lt.u32.totalorder %s3389_s1, %s3707_s19 }
 0x13f   : > { %p2701_p7 = pnand %p2699_p10, %p3778_p1  ;;  %p2705_p3 = scmp.lt.u32.totalorder %s2703_s20, %s2698_s0 }
 0x140   : > { %p2707_p2 = scmp.lt.u32.totalorder %s2698_s0, %s3389_s1 }
 0x141   : > { %p2702_p12 = pneg %p2701_p7  ;;  %p2706_p9 = por %p2705_p3, %p2704_p4 }
 0x143   : > { %p2708_p8 = por %p2707_p2, %p2706_p9 }
 0x145   : > { %p2709_p0 = pnand %p2708_p8, %p2702_p12 }
 0x147   : > { %2712 = shalt.err (!%p2709_p0)
}
 0x148   : > { %s2713_s30 = scalar_lea.vmem %s850_s6, 16  ;;  %s2856_s3 = smov [#allocation21]  }
 0x149   : > { %p2714_p5 = scmp.ne.s32.totalorder %s850_s6, %s2713_s30  ;;  %s2718_s24 = sshll.u32 %s2856_s3, 4  ;;  %s2719_s24 = int_to_ptr.vmem [resolvable:$false] %s2718_s24 }
 0x14a   : > { %s2720_s27 = scalar_lea.vmem %s2719_s24, 32  ;;  %p2721_p10 = scmp.lt.s32.totalorder %s850_s6, %s2719_s24 }
 0x14b   : > { %p2716_p11 = pnand %p2714_p5, %p3778_p1  ;;  %p2722_p7 = scmp.lt.s32.totalorder %s2720_s27, %s2713_s30 }
 0x14d   : > { %p2717_p13 = pneg %p2716_p11  ;;  %p2723_p6 = por %p2722_p7, %p2721_p10 }
 0x14f   : > { %p2724_p3 = pnand %p2723_p6, %p2717_p13 }
 0x151   : > { %2727 = shalt.err (!%p2724_p3)
}
 0x152   : > { %p3783_p4 = scmp.ne.s32.totalorder %s3760_s26, 0  ;;  %s3784_s15 = scalar_lea.sflag [#allocation20], %s3009_s4 }
 0x153   : > { %p3785_p12 = scmp.ne.s32.totalorder %s3770_s21, 0 }
 0x154   : > { %2327 = dma.hbm_to_vmem [thread:$0]  (!%p3783_p4), %s3389_s1, 16, %s850_s6, %s3784_s15  }
 0x155   : > { %858 = sbr.rel (%p3785_p12) target bundleno = 2486 (0x9b6), region = 100  ;;  %p3786_p1 = scmp.eq.s32.totalorder (!%p3785_p12), %s3196_s12, 0 }
 0x15c   : > { %2797 = dma.done.wait (%p3786_p1), [#allocation5], 128   ;;  %p3787_p9 = pmov %p3786_p1 }
 0x15d   : > { %s864_s23 = sand.u32 1, %s3196_s12   ;;  %s3419_s18 = sand.u32 1, %s2834_s25  }
 0x15e   : > { %2799 = vsyncadd (%p3787_p9), [#allocation5], 4294967168  ;;  %s3422_s26 = sshll.u32 %s3419_s18, 4  ;;  %s865_s4 = scalar_lea.sflag [#allocation8], %s864_s23 }
 0x15f   : > { %s868_s28 = scalar_lea.vmem [#allocation7], %s3422_s26  ;;  %p3788_p6 = scmp.ne.s32.totalorder %s3769_s11, 0 }
 0x161   : > { %2801 = dma.done.wait (%p3788_p6), %s865_s4, 512  }
 0x162   : > { %2803 = vsyncadd (%p3788_p6), %s865_s4, 4294966784  ;;  %s883_s7 = scalar_lea.sflag [#allocation11], %s864_s23 }
 0x163   : > { %2805 = dma.done.wait (%p3788_p6), %s883_s7, 512  }
 0x164   : > { %2807 = vsyncadd (%p3788_p6), %s883_s7, 4294966784  ;;  %s901_s10 = scalar_lea.sflag [#allocation14], %s864_s23 }
 0x165   : > { %2809 = dma.done.wait (%p3788_p6), %s901_s10, 512  }
 0x166   : > { %2811 = vsyncadd (%p3788_p6), %s901_s10, 4294966784  ;;  %s919_s22 = scalar_lea.sflag [#allocation17], %s864_s23 }
 0x167   : > { %2813 = dma.done.wait (%p3788_p6), %s919_s22, 272  }
 0x168   : > { %2815 = vsyncadd (%p3788_p6), %s919_s22, 4294967024  ;;  %s936_s2 = scalar_lea.sflag [#allocation20], %s864_s23 }
 0x169   : > { %2817 = dma.done.wait (%p3788_p6), %s936_s2, 32  }
 0x16a   : > { %2819 = vsyncadd (%p3788_p6), %s936_s2, 4294967264  ;;  %p1057_p2 = scmp.lt.s32.totalorder %s3196_s12, 14  ;;  %s3789_s4 = sld [smem:[#allocation44_spill]] }
 0x16b   : > { %s3790_s22 = sld [smem:[#allocation45_spill]]  ;;  %s3791_s20 = sld [smem:[#allocation46_spill]] }
 0x16c   : > { %s3455_s30 = scalar_select %p1057_p2, %s3196_s12, 14 }
 0x16d   : > { %s3792_s3 = sld [smem:[#allocation49_spill]]  ;;  %s946_s17 = scalar_lea.vmem [#allocation21], %s3419_s18 }
 0x16e   : > { %p3793_p8 = scmp.ne.s32.totalorder %s3196_s12, 0 }
 0x16f   : > { %s3794_s15 = sld [smem:[#allocation37_spill]] (!%p3793_p8)  ;;  %s3795_s7 = sld [smem:[#allocation36_spill]] (!%p3793_p8)  ;;  %v2857_v2 = vmov (!%p3793_p8), 0   ;;  %v1084_v3 = vlaneseq (!%p3793_p8)  ;;  %vm1132_vm1 = vcmask (!%p3793_p8), 125952   ;;  %v2858_v8 = vmov (!%p3793_p8), 0.0   ;;  %v1077_v11 = vld [vmem:[#allocation4] sm:$0xff] (!%p3793_p8) }
 0x170   : > { %s1062_s11 = scalar_lea.vmem %s3789_s4, %s3455_s30  ;;  %1076 = sbr.rel (%p3793_p8) target bundleno = 513 (0x201), region = 148  ;;  %2379 = vset.pattern.permute.xlu1 (!%p3793_p8), %v2857_v2  ;;  %2378 = vset.pattern.permute.xlu0 (!%p3793_p8), %v2857_v2  ;;  %vm1078_vm2 = vcmask (!%p3793_p8), 261120   ;;  %vm1119_vm8 = vcmask (!%p3793_p8), 130048  }
 0x171   : > { %s1065_s2 = scalar_lea.vmem %s3790_s22, %s3455_s30  ;;  %s1068_s6 = scalar_lea.vmem %s3791_s20, %s3455_s30  ;;  %v1122_v7 = vshrl.u32 (!%p3793_p8), %v1084_v3, 7  ;;  %1079 = vst.msk [vmem:[#allocation22] sm:$0xff] (!%p3793_p8), %vm1078_vm2, %v1077_v11  ;;  %v1085_v14 = vand.u32 (!%p3793_p8), 127, %v1084_v3 }
 0x172   : > { %s3796_s5 = sld [smem:[#allocation38_spill]] (!%p3793_p8) }
 0x173   : > { %s1071_s24 = scalar_lea.vmem %s3792_s3, %s3455_s30  ;;  %s3797_s3 = sld [smem:[#allocation40_spill]] (!%p3793_p8)  ;;  %v2119_v15 = vadd.s32 (!%p3793_p8), 4294967288, %v1085_v14  ;;  %vm1086_vm5 = vcmp.lt.s32.totalorder (!%p3793_p8), %v1085_v14, 8 }
 0x175   : > { %v1101_v0 = vld [vmem:[%s3794_s15] sm:$0xff] (!%p3793_p8)  ;;  %v1102_v5 = vld [vmem:[%s3794_s15 + $0x8] sm:$0xff] (!%p3793_p8) }
 0x176   : > { %v1087_v1 = vld [vmem:[%s3795_s7] sm:$0xff] (!%p3793_p8)  ;;  %1105 = vperm.xlu1 (!%p3793_p8), %2379, %v1101_v0   ;;  %v1088_v6 = vld [vmem:[%s3795_s7 + $0x8] sm:$0xff] (!%p3793_p8) }
 0x177   : > { %1090 = vperm.xlu0 %2378, %v1087_v1  }
 0x178   : > { %v2122_v4 = vld [vmem:[%s3796_s5] ss:$0 sm:$0xff] }
 0x179   : > { %vm1128_vm0 = vcmp.eq.s32.totalorder %v2122_v4, %v1122_v7  ;;  %v1080_v12 = vld [vmem:[%s3797_s3] sm:$0xff]  ;;  %v1081_v13 = vld [vmem:[%s3797_s3 + $0x8] sm:$0xff] }
 0x17a   : > { %1108 = vperm.xlu1 %2379, %v1102_v5   ;;  %v2123_v9 = vsel %vm1128_vm0, 1.0, %v2858_v8  ;;  %1082 = vst.msk [vmem:[#allocation23] sm:$0xff] %vm1078_vm2, %v1080_v12  ;;  %1083 = vst.msk [vmem:[#allocation23 + $0x8] sm:$0xff] %vm1078_vm2, %v1081_v13 }
 0x17b   : > { %1093 = vperm.xlu0 %2378, %v1088_v6   ;;  %v1131_v10 = vpack.c.bf16 %v2123_v9, %v2123_v9 }
 0x17d   : > { %1133 = vst.msk [vmem:[#allocation3] sm:$0xf] %vm1132_vm1, %v1131_v10 }
 0x1f5   : > { %v1106_v16 = vpop.permute.xlu1 %1105 }
 0x1f6   : > { %v1091_v17 = vpop.permute.xlu0 %1090  ;;  %vm1110_vm3 = vcmp.eq.s32.totalorder %v1106_v16, %v2119_v15 }
 0x1f7   : > { %vm1095_vm4 = vcmp.eq.s32.totalorder %v1091_v17, %v1085_v14  ;;  %v2120_v18 = vsel %vm1110_vm3, 1.0, %v2858_v8 }
 0x1f8   : > { %v2117_v19 = vsel %vm1095_vm4, 1.0, %v2858_v8 }
 0x1f9   : > { %v1109_v20 = vpop.permute.xlu1 %1108  ;;  %v1116_v24 = vsel %vm1086_vm5, %v2117_v19, %v2120_v18 }
 0x1fa   : > { %v1094_v21 = vpop.permute.xlu0 %1093  ;;  %vm1111_vm6 = vcmp.eq.s32.totalorder %v1109_v20, %v2119_v15 }
 0x1fb   : > { %vm1096_vm7 = vcmp.eq.s32.totalorder %v1094_v21, %v1085_v14  ;;  %v2121_v22 = vsel %vm1111_vm6, 1.0, %v2858_v8 }
 0x1fc   : > { %v2118_v23 = vsel %vm1096_vm7, 1.0, %v2858_v8 }
 0x1fd   : > { %v1117_v25 = vsel %vm1086_vm5, %v2118_v23, %v2121_v22 }
 0x1fe   : > { %v1118_v26 = vpack.c.bf16 %v1117_v25, %v1116_v24 }
 0x200   : > { %1120 = vst.msk [vmem:[#allocation2] sm:$0xff] %vm1119_vm8, %v1118_v26 }
 0x201 PF: > { %v2380_v27 = vld [vmem:[%s868_s28] sm:$0xff]   ;;  %v2859_v28 = vmov 0.0   ;;  %s3798_s1 = scalar_lea.vmem [#allocation9], %s3422_s26  ;;  %v2382_v30 = vld [vmem:[%s868_s28 + $0x8] sm:$0xff]   ;;  %vm2860_vm9 = vmmov 0   ;;  %vm1154_vm10 = vcmask 261120   ;;  %s3804_s10 = scalar_lea.vmem %s3696_s8, %s3455_s30 }
 0x202   : > { %2193 = vmatprep.subr.bf16.mxu0 %v2859_v28  ;;  %2201 = vmatprep.subr.bf16.mxu1 %v2859_v28  ;;  %v2381_v29 = vld [vmem:[%s3798_s1] sm:$0xff]   ;;  %s3799_s0 = smov %s3798_s1  ;;  %s3800_s28 = scalar_lea.vmem [#allocation10], %s3422_s26  ;;  %vm1317_vm11 = vcmask 130048   ;;  %v2134_v56 = vld [vmem:[%s3804_s10] ss:$0 sm:$0xff] }
 0x203   : > { %2194 = vmatpush3.bf16.msra.mxu0 %v2380_v27  ;;  %2197 = vmatprep.mubr.msk.bf16.mxu0 %vm2860_vm9, %v2859_v28  ;;  %v2383_v31 = vld [vmem:[%s3799_s0 + $0x8] sm:$0xff]   ;;  %v3517_v32 = vld [vmem:[#allocation22] sm:$0xff]  ;;  %s3801_s5 = smov %s3800_s28  ;;  %s3802_s20 = scalar_lea.vmem [#allocation12], %s3422_s26 }
 0x204   : > { %2202 = vmatpush3.bf16.msra.mxu1 %v2381_v29  ;;  %2195 = vmatprep.subr.bf16.mxu0 %v2859_v28  ;;  %v3521_v33 = vpack.c.bf16 %v3517_v32, %v3517_v32  ;;  %v2384_v34 = vld [vmem:[%s3800_s28] sm:$0xff]   ;;  %s3803_s29 = smov %s3802_s20  ;;  %v2135_v3 = vld [vmem:[%s1062_s11] ss:$0 sm:$0xff]  ;;  %s3806_s11 = scalar_lea.vmem [#allocation15], %s3422_s26 }
 0x205   : > { %2203 = vmatprep.subr.bf16.mxu1 %v2859_v28  ;;  %2205 = vmatprep.mubr.msk.bf16.mxu1 %vm2860_vm9, %v2859_v28  ;;  %v2385_v35 = vld [vmem:[%s3801_s5 + $0x8] sm:$0xff]   ;;  %s3811_s21 = smov %s3806_s11  ;;  %s3812_s27 = scalar_lea.vmem [#allocation18], %s3422_s26 }
 0x206   : > { %v3538_v36 = vld [vmem:[#allocation23] sm:$0xff]  ;;  %v3540_v37 = vld [vmem:[#allocation23 + $0x8] sm:$0xff]  ;;  %s3813_s10 = smov %s3812_s27  ;;  %s3814_s22 = scalar_lea.vmem [#allocation16], %s3419_s18 }
 0x207   : > { %2196 = vmatpush3.bf16.msra.mxu0 %v2382_v30  ;;  %v1256_v38 = vpack.c.bf16 %v3540_v37, %v3538_v36  ;;  %v1255_v48 = vld [vmem:[#allocation2] sm:$0xff]  ;;  %v2387_v54 = vld [vmem:[%s3803_s29 + $0x8] sm:$0xff]   ;;  %p2331_p0 = scmp.eq.s32.totalorder %s3196_s12, 14 }
 0x208   : > { %2204 = vmatpush3.bf16.msra.mxu1 %v2383_v31  ;;  %2209 = vmatprep.subr.bf16.mxu0 %v2859_v28  ;;  %v2386_v53 = vld [vmem:[%s3802_s20] sm:$0xff]   ;;  %v2139_v31 = vld [vmem:[%s1065_s2] ss:$0 sm:$0xff] }
 0x209   : > { %2217 = vmatprep.subr.bf16.mxu1 %v2859_v28  ;;  %v2388_v22 = vld [vmem:[%s3806_s11] sm:$0xff]  }
 0x20a   : > { %2198 = vmatmul.mubr.msk.bf16.vlgmr.msra.gmra.mrb[0].mxu0 %vm1154_vm10, %v3521_v33 }
 0x20b   : > { %2206 = vmatmul.mubr.msk.bf16.vlgmr.msra.gmra.mrb[0].mxu1 %vm1154_vm10, %v3521_v33  ;;  %2210 = vmatpush3.bf16.msra.mxu0 %v2384_v34 }
 0x20c   : > { %2211 = vmatprep.subr.bf16.mxu0 %v2859_v28  ;;  %2213 = vmatprep.mubr.msk.bf16.mxu0 %vm2860_vm9, %v2859_v28 }
 0x20d   : > { %2219 = vmatprep.mubr.msk.bf16.mxu1 %vm2860_vm9, %v2859_v28 }
 0x20f   : > { %2212 = vmatpush3.bf16.msra.mxu0 %v2385_v35  ;;  %v2140_v35 = vld [vmem:[%s1068_s6] ss:$0 sm:$0xff]  ;;  %s3809_s6 = scalar_lea.vmem [#allocation13], %s3422_s26  ;;  %s2861_s26 = smov [#allocation23]  }
 0x210   : > { %2223 = vmatprep.subr.bf16.mxu0 %v2859_v28  ;;  %s3810_s2 = smov %s3809_s6  ;;  %s1775_s30 = sshll.u32 %s2861_s26, 4  ;;  %s1776_s30 = int_to_ptr.vmem [resolvable:$true] %s1775_s30 }
 0x211   : > { %p2735_p10 = scmp.lt.s32.totalorder %s1776_s30, %s1776_s30 }
 0x212   : > { %2214 = vmatmul.mubr.msk.bf16.vlgmr.msra.gmra.mrb[4].mxu0 %vm1154_vm10, %v1256_v38 }
 0x213   : > { %2227 = vmatprep.mubr.msk.bf16.mxu0 %vm2860_vm9, %v2859_v28  ;;  %2224 = vmatpush3.bf16.msra.mxu0 %v2386_v53 }
 0x214   : > { %2225 = vmatprep.subr.bf16.mxu0 %v2859_v28 }
 0x217   : > { %2226 = vmatpush3.bf16.msra.mxu0 %v2387_v54 }
 0x218   : > { %2237 = vmatprep.subr.bf16.mxu0 %v2859_v28 }
 0x2dd   : > { %v1192_v39 = vpop.f32.mrb[0].mxu0 }
 0x2de   : > { %v1248_v40 = vpop.f32.mrb[0].mxu1  ;;  %v2199_v41 = vpop.f32.mrb[1].mxu0 }
 0x2df   : > { %v1254_v42 = vpack.c.bf16 %v1248_v40, %v1192_v39  ;;  %v2207_v43 = vpop.f32.mrb[1].mxu1  ;;  %v1195_v44 = vpop.f32.mrb[2].mxu0 }
 0x2e0   : > { %v1251_v45 = vpop.f32.mrb[2].mxu1  ;;  %v2200_v46 = vpop.f32.mrb[3].mxu0 }
 0x2e1   : > { %v2208_v47 = vpop.f32.mrb[3].mxu1  ;;  %2218 = vmatpush3.bf16.msra.mxu1 %v1254_v42 }
 0x2e2   : > { %2231 = vmatprep.subr.bf16.mxu1 %v2859_v28  ;;  %v1490_v47 = vld [vmem:[#allocation3] sm:$0xf] }
 0x2e4   : > { %2220 = vmatmul.mubr.msk.bf16.vlgmr.msra.gmra.mrb[4].mxu1 %vm1317_vm11, %v1255_v48  ;;  %v2389_v48 = vld [vmem:[%s3809_s6] sm:$0xff]  }
 0x2e5   : > { %2233 = vmatprep.mubr.msk.bf16.mxu1 %vm2860_vm9, %v2859_v28  ;;  %v1310_v49 = vpop.f32.mrb[4].mxu0 }
 0x2e6   : > { %v2215_v50 = vpop.f32.mrb[5].mxu0 }
 0x2e7   : > { %v1313_v51 = vpop.f32.mrb[6].mxu0 }
 0x2e8   : > { %v2216_v52 = vpop.f32.mrb[7].mxu0 }
 0x3b7   : > { %v1355_v55 = vpop.f32.mrb[4].mxu1 }
 0x3b8   : > { %v1356_v57 = vadd.f32 %v1355_v55, %v1310_v49  ;;  %v2221_v58 = vpop.f32.mrb[5].mxu1 }
 0x3b9   : > { %v1358_v59 = vpop.f32.mrb[6].mxu1  ;;  %v2393_v58 = vld [vmem:[%s3813_s10 + $0x8] sm:$0xff]  }
 0x3ba   : > { %v1369_v60 = vadd.f32 %v2134_v56, %v1356_v57  ;;  %v1359_v61 = vadd.f32 %v1358_v59, %v1313_v51  ;;  %v2222_v62 = vpop.f32.mrb[7].mxu1  ;;  %v2392_v57 = vld [vmem:[%s3812_s27] sm:$0xff]  }
 0x3bc   : > { %v1370_v63 = vadd.f32 %v2134_v56, %v1359_v61  ;;  %v1371_v0 = vmax.f32 %v1369_v60, 0.0  ;;  %v2148_v60 = vld [vmem:[%s3814_s22] ss:$0 sm:$0xff] }
 0x3be   : > { %v1372_v1 = vmax.f32 %v1370_v63, 0.0 }
 0x3c0   : > { %v1373_v2 = vpack.c.bf16 %v1372_v1, %v1371_v0 }
 0x3c2   : > { %2228 = vmatmul.mubr.msk.bf16.vlgmr.msra.gmra.mrb[8].mxu0 %vm1154_vm10, %v1373_v2 }
 0x3c3   : > { %2241 = vmatprep.mubr.msk.bf16.mxu0 %vm2860_vm9, %v2859_v28  ;;  %2238 = vmatpush3.bf16.msra.mxu0 %v2388_v22 }
 0x3c4   : > { %2239 = vmatprep.subr.bf16.mxu0 %v2859_v28 }
 0x495   : > { %v1434_v4 = vpop.f32.mrb[8].mxu0 }
 0x496   : > { %v1435_v5 = vadd.f32 %v2135_v3, %v1434_v4  ;;  %v2229_v6 = vpop.f32.mrb[9].mxu0 }
 0x497   : > { %v1437_v7 = vpop.f32.mrb[10].mxu0 }
 0x498   : > { %v1438_v8 = vadd.f32 %v2135_v3, %v1437_v7  ;;  %v2230_v9 = vpop.f32.mrb[11].mxu0  ;;  %v1443_v10 = vsel %vm1154_vm10, %v1435_v5, 0.0 }
 0x499   : > { %1444 = vadd.xlane.f32.xlu0 %v1443_v10 }
 0x49a   : > { %v1446_v11 = vsel %vm1154_vm10, %v1438_v8, 0.0 }
 0x49d   : > { %1447 = vadd.xlane.f32.xlu0 %v1446_v11 }
 0x526   : > { %v1445_v12 = vpop.xlane.xlu0 %1444 }
 0x527   : > { %v1450_v13 = vmul.f32 0.03125, %v1445_v12 }
 0x529   : > { %v1452_v14 = vsub.f32 %v1435_v5, %v1450_v13 }
 0x52a   : > { %v1448_v15 = vpop.xlane.xlu0 %1447 }
 0x52b   : > { %v1451_v16 = vmul.f32 0.03125, %v1448_v15  ;;  %v1454_v17 = vmul.f32 %v1452_v14, %v1452_v14 }
 0x52d   : > { %v1453_v18 = vsub.f32 %v1438_v8, %v1451_v16  ;;  %v1456_v19 = vsel %vm1154_vm10, %v1454_v17, 0.0 }
 0x52e   : > { %1457 = vadd.xlane.f32.xlu1 %v1456_v19 }
 0x52f   : > { %v1455_v20 = vmul.f32 %v1453_v18, %v1453_v18 }
 0x531   : > { %v1459_v21 = vsel %vm1154_vm10, %v1455_v20, 0.0 }
 0x532   : > { %1460 = vadd.xlane.f32.xlu1 %v1459_v21 }
 0x5bb   : > { %v1458_v23 = vpop.xlane.xlu1 %1457 }
 0x5bc   : > { %v1462_v24 = vmul.f32 0.03125, %v1458_v23 }
 0x5be   : > { %v1464_v25 = vadd.f32 1e-05, %v1462_v24 }
 0x5bf   : > { %v1461_v26 = vpop.xlane.xlu1 %1460 }
 0x5c0   : > { %2394 = vrsqrt.f32 %v1464_v25  ;;  %v1463_v27 = vmul.f32 0.03125, %v1461_v26 }
 0x5c2   : > { %v1465_v29 = vadd.f32 1e-05, %v1463_v27 }
 0x5c4   : > { %2396 = vrsqrt.f32 %v1465_v29 }
 0x5ca   : > { %v2395_v30 = vpop.eup %2394 }
 0x5cb   : > { %v1468_v34 = vmul.f32 %v2395_v30, %v1452_v14 }
 0x5cd   : > { %v1476_v38 = vmul.f32 %v2139_v31, %v1468_v34 }
 0x5ce   : > { %v2397_v39 = vpop.eup %2396 }
 0x5cf   : > { %v1469_v40 = vmul.f32 %v2397_v39, %v1453_v18  ;;  %v1484_v41 = vadd.f32 %v2140_v35, %v1476_v38 }
 0x5d1   : > { %v1477_v42 = vmul.f32 %v2139_v31, %v1469_v40  ;;  %v1486_v43 = vadd.f32 %v1484_v41, %v3538_v36  ;;  %v2391_v36 = vld [vmem:[%s3810_s2 + $0x8] sm:$0xff]  }
 0x5d3   : > { %v1485_v44 = vadd.f32 %v2140_v35, %v1477_v42  ;;  %1488 = vst.msk [vmem:[#allocation23] sm:$0xff] %vm1154_vm10, %v1486_v43 }
 0x5d5   : > { %v1487_v45 = vadd.f32 %v1485_v44, %v3540_v37  ;;  %v2390_v37 = vld [vmem:[%s3811_s21 + $0x8] sm:$0xff]  }
 0x5d6   : > { %2240 = vmatpush3.bf16.msra.mxu0 %v2390_v37 }
 0x5d7   : > { %v1491_v46 = vpack.c.bf16 %v1487_v45, %v1486_v43  ;;  %1489 = vst.msk [vmem:[#allocation23 + $0x8] sm:$0xff] %vm1154_vm10, %v1487_v45  ;;  %2253 = vmatprep.subr.bf16.mxu0 %v2859_v28 }
 0x5d9   : > { %2232 = vmatpush3.bf16.msra.mxu1 %v1491_v46 }
 0x5da   : > { %2245 = vmatprep.subr.bf16.mxu1 %v2859_v28 }
 0x5dc   : > { %2234 = vmatmul.mubr.msk.bf16.vlgmr.msra.gmra.mrb[8].mxu1 %vm1317_vm11, %v1490_v47 }
 0x5dd   : > { %2246 = vmatpush3.bf16.msra.mxu1 %v2389_v48  ;;  %2249 = vmatprep.mubr.msk.bf16.mxu1 %vm2860_vm9, %v2859_v28 }
 0x5de   : > { %2247 = vmatprep.subr.bf16.mxu1 %v2859_v28 }
 0x5e1   : > { %2248 = vmatpush3.bf16.msra.mxu1 %v2391_v36 }
 0x5e4   : > { %2250 = vmatmul.mubr.msk.bf16.vlgmr.msra.gmra.mrb[12].mxu1 %vm1154_vm10, %v3521_v33 }
 0x6af   : > { %v1529_v49 = vpop.f32.mrb[8].mxu1 }
 0x6b0   : > { %v1539_v50 = vpack.c.bf16 %v1529_v49, %v1529_v49  ;;  %v2235_v51 = vpop.f32.mrb[9].mxu1 }
 0x6b1   : > { %v1532_v52 = vpop.f32.mrb[10].mxu1 }
 0x6b2   : > { %2242 = vmatmul.mubr.msk.bf16.vlgmr.msra.gmra.mrb[12].mxu0 %vm1154_vm10, %v1539_v50  ;;  %v2236_v53 = vpop.f32.mrb[11].mxu1 }
 0x6b3   : > { %2257 = vmatprep.mubr.msk.bf16.mxu0 %vm2860_vm9, %v2859_v28  ;;  %2254 = vmatpush3.bf16.msra.mxu0 %v2392_v57 }
 0x6b4   : > { %2255 = vmatprep.subr.bf16.mxu0 %v2859_v28  ;;  %v2149_v28 = vld [vmem:[%s1071_s24] ss:$0 sm:$0xff]  ;;  %s2728_s24 = scalar_lea.vmem %s1776_s30, 256 }
 0x6b5   : > { %p2729_p5 = scmp.ne.s32.totalorder %s1776_s30, %s2728_s24  ;;  %p2736_p7 = scmp.lt.s32.totalorder %s2728_s24, %s2728_s24 }
 0x6b7   : > { %v1645_v54 = vpop.f32.mrb[12].mxu1  ;;  %2256 = vmatpush3.bf16.msra.mxu0 %v2393_v58  ;;  %p2730_p11 = pnand %p2729_p5, %p2331_p0  ;;  %p2737_p3 = por %p2736_p7, %p2735_p10 }
 0x6b8   : > { %v2251_v55 = vpop.f32.mrb[13].mxu1 }
 0x6b9   : > { %v1648_v56 = vpop.f32.mrb[14].mxu1  ;;  %p2731_p13 = pneg %p2730_p11 }
 0x6ba   : > { %v2252_v33 = vpop.f32.mrb[15].mxu1 }
 0x6bb   : > { %p2738_p4 = pnand %p2737_p3, %p2731_p13 }
 0x785   : > { %v1593_v59 = vpop.f32.mrb[12].mxu0 }
 0x786   : > { %v1646_v61 = vadd.f32 %v1645_v54, %v1593_v59  ;;  %v2243_v62 = vpop.f32.mrb[13].mxu0 }
 0x787   : > { %v1596_v63 = vpop.f32.mrb[14].mxu0 }
 0x788   : > { %v1658_v0 = vadd.f32 %v2148_v60, %v1646_v61  ;;  %v2244_v1 = vpop.f32.mrb[15].mxu0 }
 0x78a   : > { %v1659_v2 = vmax.f32 %v1658_v0, 0.0 }
 0x78c   : > { %v1660_v3 = vpack.c.bf16 %v1659_v2, %v1659_v2 }
 0x78e   : > { %2258 = vmatmul.mubr.msk.bf16.vlgmr.msra.gmra.mrb[16].mxu0 %vm1154_vm10, %v1660_v3 }
 0x861   : > { %v1721_v4 = vpop.f32.mrb[16].mxu0 }
 0x862   : > { %v1722_v5 = vadd.f32 %v2149_v28, %v1721_v4  ;;  %v2259_v6 = vpop.f32.mrb[17].mxu0 }
 0x863   : > { %v1724_v7 = vpop.f32.mrb[18].mxu0 }
 0x864   : > { %v1729_v8 = vsel %vm1154_vm10, %v1722_v5, 0.0  ;;  %v2260_v9 = vpop.f32.mrb[19].mxu0 }
 0x865   : > { %1730 = vadd.xlane.f32.xlu0 %v1729_v8 }
 0x8f2   : > { %v1731_v10 = vpop.xlane.xlu0 %1730 }
 0x8f3   : > { %v1732_v11 = vmul.f32 0.03125, %v1731_v10 }
 0x8f5   : > { %v1733_v12 = vsub.f32 %v1722_v5, %v1732_v11 }
 0x8f7   : > { %v1734_v13 = vmul.f32 %v1733_v12, %v1733_v12 }
 0x8f9   : > { %v1735_v14 = vsel %vm1154_vm10, %v1734_v13, 0.0 }
 0x8fa   : > { %1736 = vadd.xlane.f32.xlu1 %v1735_v14 }
 0x8fb   : > { %2741 = shalt.err (!%p2738_p4)
}
 0x8fc   : > { %s3816_s28 = sld [smem:[#allocation52_spill]] }
 0x902   : > { %s2742_s5 = scalar_lea.hbm %s3816_s28, 256 }
 0x903   : > { %p2743_p12 = scmp.ne.s32.totalorder %s3816_s28, %s2742_s5  ;;  %p2748_p6 = scmp.lt.u32.totalorder %s2742_s5, %s3816_s28 }
 0x905   : > { %p2744_p1 = pnand %p2743_p12, %p2331_p0 }
 0x907   : > { %p2745_p9 = pneg %p2744_p1 }
 0x909   : > { %p2750_p2 = pnand %p2748_p6, %p2745_p9 }
 0x90b   : > { %2753 = shalt.err (!%p2750_p2)
}
 0x90c   : > { %s2862_s21 = smov 128   ;;  %s2863_s27 = smov 8   ;;  %v2154_v21 = vld [vmem:[%s946_s17] ss:$0 sm:$0xff] }
 0x90d   : > { %2288 = dma.vmem_to_hbm [thread:$0]  (%p2331_p0), %s1776_s30, 256, %s3816_s28, [#allocation24], %s2862_s21, %s2862_s21, %s2863_s27  }
 0x90e   : > { %s3817_s23 = scalar_lea.vmem [#allocation19], %s3419_s18  ;;  %s2864_s4 = smov [#allocation22]  }
 0x90f   : > { %v2153_v19 = vld [vmem:[%s3817_s23] ss:$0 sm:$0xff]  ;;  %s1765_s11 = sshll.u32 %s2864_s4, 4  ;;  %s1766_s11 = int_to_ptr.vmem [resolvable:$true] %s1765_s11 }
 0x910   : > { %s2754_s26 = scalar_lea.vmem %s1766_s11, 128  ;;  %p2761_p13 = scmp.lt.s32.totalorder %s1766_s11, %s1766_s11 }
 0x911   : > { %p2755_p8 = scmp.ne.s32.totalorder %s1766_s11, %s2754_s26  ;;  %p2762_p10 = scmp.lt.s32.totalorder %s2754_s26, %s2754_s26 }
 0x913   : > { %p2756_p5 = pnand %p2755_p8, %p2331_p0  ;;  %p2763_p7 = por %p2762_p10, %p2761_p13 }
 0x915   : > { %p2757_p11 = pneg %p2756_p5 }
 0x917   : > { %p2764_p3 = pnand %p2763_p7, %p2757_p11 }
 0x987   : > { %v1737_v15 = vpop.xlane.xlu1 %1736 }
 0x988   : > { %v1738_v16 = vmul.f32 0.03125, %v1737_v15 }
 0x98a   : > { %v1739_v17 = vadd.f32 1e-05, %v1738_v16 }
 0x98c   : > { %2398 = vrsqrt.f32 %v1739_v17 }
 0x996   : > { %v2399_v18 = vpop.eup %2398 }
 0x997   : > { %v1741_v20 = vmul.f32 %v2399_v18, %v1733_v12 }
 0x999   : > { %v1748_v22 = vmul.f32 %v2153_v19, %v1741_v20 }
 0x99b   : > { %v1755_v23 = vadd.f32 %v2154_v21, %v1748_v22 }
 0x99d   : > { %v1756_v24 = vadd.f32 %v1755_v23, %v3517_v32 }
 0x99f   : > { %1757 = vst.msk [vmem:[#allocation22] sm:$0xff] %vm1154_vm10, %v1756_v24 }
 0x9a0   : > { %2767 = shalt.err (!%p2764_p3)
}
 0x9a1   : > { %s3818_s30 = sld [smem:[#allocation51_spill]] }
 0x9a7   : > { %s2768_s24 = scalar_lea.hbm %s3818_s30, 128 }
 0x9a8   : > { %p2769_p4 = scmp.ne.s32.totalorder %s3818_s30, %s2768_s24  ;;  %p2774_p9 = scmp.lt.u32.totalorder %s2768_s24, %s3818_s30 }
 0x9aa   : > { %p2770_p12 = pnand %p2769_p4, %p2331_p0 }
 0x9ac   : > { %p2771_p1 = pneg %p2770_p12 }
 0x9ae   : > { %p2776_p6 = pnand %p2774_p9, %p2771_p1 }
 0x9b0   : > { %2779 = shalt.err (!%p2776_p6)
}
 0x9b1   : > { %2286 = dma.vmem_to_hbm [thread:$0]  (%p2331_p0), %s1766_s11, 128, %s3818_s30, [#allocation6]  }
 0x9b2   : > { %2821 = dma.done.wait (%p2331_p0), [#allocation6], 128  }
 0x9b3   : > { %2823 = vsyncadd (%p2331_p0), [#allocation6], 4294967168 }
 0x9b4   : > { %2825 = dma.done.wait (%p2331_p0), [#allocation24], 256  }
 0x9b5   : > { %2827 = vsyncadd (%p2331_p0), [#allocation24], 4294967040 }
 0x9b6 PF: > { %s3819_s27 = sld [smem:[#allocation34_spill]]  ;;  %s3820_s21 = sld [smem:[#allocation33_spill]] }
 0x9b7   : > { %s3821_s26 = sld [smem:[#allocation35_spill]]  ;;  %s3822_s2 = smov %s2834_s25 }
 0x9bc   : > { %p47_p2 = scmp.ge.s32.totalorder %s3819_s27, 17   ;;  %s3823_s25 = smov %s3820_s21 }
 0x9be   :  { %49 = sbr.rel (!%p47_p2) target bundleno = 32 (0x20), region = 276 }
 0x9c5   :  { %1795 = vsyncpa [#allocation5], 1 }
 0x9c6   :  { %1797 = vsyncpa [#allocation5 + $0x1], 1 }
 0x9c7   :  { %1798 = vsyncpa [#allocation8], 1 }
 0x9c8   :  { %1800 = vsyncpa [#allocation8 + $0x1], 1 }
 0x9c9   :  { %1801 = vsyncpa [#allocation11], 1 }
 0x9ca   :  { %1803 = vsyncpa [#allocation11 + $0x1], 1 }
 0x9cb   :  { %1804 = vsyncpa [#allocation14], 1 }
 0x9cc   :  { %1806 = vsyncpa [#allocation14 + $0x1], 1 }
 0x9cd   :  { %1807 = vsyncpa [#allocation17], 1 }
 0x9ce   :  { %1809 = vsyncpa [#allocation17 + $0x1], 1 }
 0x9cf   :  { %1810 = vsyncpa [#allocation20], 1 }
 0x9d0   :  { %1812 = vsyncpa [#allocation20 + $0x1], 1 }
 0x9d1   :  { %1813 = vsyncpa [#allocation6], 1 }
 0x9d2   :  { %1815 = vsyncpa [#allocation6 + $0x1], 1 }
 0x9d3   :  { %1816 = vsyncpa [#allocation24], 1 }

</bundles_post_ra>
